<compile_context>
chip_gen: v7x
topology: tpu7x:2x2x1
jax: 0.10.0
libtpu: 0.0.40
codegen_flags: <defaults>
</compile_context>

<pallas_src>
import jax
import jax.numpy as jnp
from jax import lax
from jax.experimental import pallas as pl
from jax.experimental.pallas import tpu as pltpu


# Matmul-operand dtype (accumulation is always f32).  Set to jnp.float32 to
# recover bit-tight (2e-3) agreement with the f32 reference at reduced speed.
_MATMUL_DTYPE = jnp.bfloat16


# ---------------------------------------------------------------------------
# Fused Pallas kernel
# ---------------------------------------------------------------------------
def _conv_bn_prelu_rows(pad_ref, w_ref, p_ref, H):
    """3x3 same-conv + folded BN + PReLU, fully lane-dense.

    pad_ref: (B, H+2, Lin)  bf16 scratch; rows 0 and H+1 are zero H-halos,
                            lane j = w*Cin + ci (W zero-pad folded into w_ref)
    w_ref:   (3, Lin, Lout) bf16 banded "big" weights, one per kernel row dy
    p_ref:   (3, Lout)      f32 [BN scale; BN bias(+conv bias); PReLU alpha],
                            tiled per lane (lane j = w*Cout + co)
    returns  (B*H, Lout)    f32
    """
    B = pad_ref.shape[0]
    Lin = pad_ref.shape[-1]
    # One MXU matmul per kernel row dy; the dx window + W zero padding are
    # baked into the banded weight, so the output is directly lane-dense.
    acc = jnp.dot(pad_ref[:, 0:H, :].reshape(B * H, Lin), w_ref[0],
                  preferred_element_type=jnp.float32)
    for dy in (1, 2):
        acc = acc + jnp.dot(pad_ref[:, dy:dy + H, :].reshape(B * H, Lin),
                            w_ref[dy], preferred_element_type=jnp.float32)
    y = acc * p_ref[0:1, :] + p_ref[1:2, :]          # folded BN (eval) + conv bias
    return jnp.where(y > 0.0, y, p_ref[2:3, :] * y)  # PReLU (f32 on the VPU)


def down_block_kernel(x_ref, w1_ref, p1_ref, w2_ref, p2_ref, sel_ref,
                      y_ref, yd_ref, x1pad_ref, y1pad_ref):
    """One batch tile: conv1+BN1+PReLU1 -> conv2+BN2+PReLU2 -> maxpool 2x2.

    x_ref:   (B, H, W*Cin)        lane-dense input slab (f32)
    w1_ref:  (3, W*Cin,  W*Cout)  banded conv1 weights (bf16)
    p1_ref:  (3, W*Cout)          [BN1 scale; BN1 bias; PReLU1 alpha] per lane
    w2_ref:  (3, W*Cout, W*Cout)  banded conv2 weights (bf16)
    p2_ref:  (3, W*Cout)
    sel_ref: (2, W*Cout, (W//2)*Cout) 0/1 selection mats for the W max-pool
    y_ref:   (B, H, W*Cout)       lane-dense full-resolution output slab
    yd_ref:  (B, H//2, (W//2)*Cout) lane-dense pooled output slab
    x1pad_ref, y1pad_ref: bf16 VMEM halo scratches (H-halo only).
    """
    B, H, Lin = x_ref.shape
    L1 = w1_ref.shape[-1]            # W * Cout
    Lo = sel_ref.shape[-1]           # (W//2) * Cout
    Ho = H // 2

    # ---- zero ONLY the 1-row halos (interior fully overwritten each step) --
    x1pad_ref[:, 0:1, :] = jnp.zeros((B, 1, Lin), x1pad_ref.dtype)
    x1pad_ref[:, H + 1:H + 2, :] = jnp.zeros((B, 1, Lin), x1pad_ref.dtype)
    y1pad_ref[:, 0:1, :] = jnp.zeros((B, 1, L1), y1pad_ref.dtype)
    y1pad_ref[:, H + 1:H + 2, :] = jnp.zeros((B, 1, L1), y1pad_ref.dtype)

    # cast to the matmul dtype once, on the way into the halo scratch
    x1pad_ref[:, 1:H + 1, :] = x_ref[...].astype(x1pad_ref.dtype)

    # ---- conv1 + BN1 + PReLU1 (Dropout p=0.0 is the identity) --------------
    y1 = _conv_bn_prelu_rows(x1pad_ref, w1_ref, p1_ref, H)       # (B*H, L1) f32
    # intermediate activation stays VMEM-resident (bf16 halo scratch)
    y1pad_ref[:, 1:H + 1, :] = y1.reshape(B, H, L1).astype(y1pad_ref.dtype)

    # ---- conv2 + BN2 + PReLU2 ----------------------------------------------
    y2 = _conv_bn_prelu_rows(y1pad_ref, w2_ref, p2_ref, H)       # (B*H, L1) f32
    y_ref[...] = y2.reshape(B, H, L1).astype(y_ref.dtype)        # full-lane store

    # ---- fused MaxPool2d(2, 2) epilogue -------------------------------------
    # H-pool: split the row axis (sublanes) into (Ho, 2) and take the max.
    y2r = y2.reshape(B, Ho, 2, L1)
    yh = jnp.maximum(y2r[:, :, 0, :], y2r[:, :, 1, :]).reshape(B * Ho, L1)
    # W-pool: two lane-dense 0/1 selection matmuls gather the even/odd column
    # groups (exact copy under f32), then an elementwise max.  No
    # lane->sublane reshapes in the epilogue.
    yd = jnp.maximum(
        jnp.dot(yh, sel_ref[0], preferred_element_type=jnp.float32),
        jnp.dot(yh, sel_ref[1], preferred_element_type=jnp.float32))
    yd_ref[...] = yd.reshape(B, Ho, Lo).astype(yd_ref.dtype)


# ---------------------------------------------------------------------------
# pallas_call wrapper
# ---------------------------------------------------------------------------
def _pick_batch_tile(N, bytes_per_batch, budget=8 << 20):
    """Largest divisor of N whose per-step VMEM footprint stays modest."""
    bt = max(1, min(N, budget // max(int(bytes_per_batch), 1)))
    while N % bt:
        bt -= 1
    return bt


def _down_block_pallas(x_slab, w1, p1, w2, p2, sel):
    N, H, Lin = x_slab.shape
    L1 = w1.shape[-1]
    Lo = sel.shape[-1]
    Ho = H // 2

    bytes_per_batch = (H * Lin * 4 + H * L1 * 4 + Ho * Lo * 4
                       + (H + 2) * Lin * 2 + (H + 2) * L1 * 2)
    BT = _pick_batch_tile(N, bytes_per_batch)
    grid = (N // BT,)

    return pl.pallas_call(
        down_block_kernel,
        out_shape=(
            jax.ShapeDtypeStruct((N, H, L1), x_slab.dtype),
            jax.ShapeDtypeStruct((N, Ho, Lo), x_slab.dtype),
        ),
        grid_spec=pltpu.PrefetchScalarGridSpec(
            num_scalar_prefetch=0,
            grid=grid,
            in_specs=[
                pl.BlockSpec((BT, H, Lin), lambda n: (n, 0, 0)),
                pl.BlockSpec(w1.shape, lambda n: (0, 0, 0)),
                pl.BlockSpec(p1.shape, lambda n: (0, 0)),
                pl.BlockSpec(w2.shape, lambda n: (0, 0, 0)),
                pl.BlockSpec(p2.shape, lambda n: (0, 0)),
                pl.BlockSpec(sel.shape, lambda n: (0, 0, 0)),
            ],
            out_specs=[
                pl.BlockSpec((BT, H, L1), lambda n: (n, 0, 0)),
                pl.BlockSpec((BT, Ho, Lo), lambda n: (n, 0, 0)),
            ],
            scratch_shapes=[
                pltpu.VMEM((BT, H + 2, Lin), _MATMUL_DTYPE),  # padded input
                pltpu.VMEM((BT, H + 2, L1), _MATMUL_DTYPE),   # padded conv1 act
            ],
        ),
        compiler_params=pltpu.CompilerParams(
            # keeps both v7x TensorCores fed when the batch-tile grid is > 1
            dimension_semantics=("parallel",),
            # default VMEM limits are ample at these shapes; raise it (v5e/v6e
            # have 128 MiB, v7x 64 MiB) when scaling to real images/strips.
        ),
    )(x_slab, w1, p1, w2, p2, sel)


# ---------------------------------------------------------------------------
# Parameter packing: banded weights, folded BN, lane-tiled scale/bias/alpha
# ---------------------------------------------------------------------------
def _make_big_weights(w_hwio, W, dtype):
    """(3,3,Cin,Cout) -> (3, W*Cin, W*Cout) banded weights (zero-pad folded in).

    big[dy, wi*Cin+ci, wo*Cout+co] = w_hwio[dy, dx, ci, co]  iff wi == wo+dx-1.
    """
    kh, kw, Cin, Cout = w_hwio.shape
    wi = jnp.arange(W)
    wo = jnp.arange(W)
    dxs = jnp.arange(kw)
    # mask[dx, wi, wo] = (wi == wo + dx - 1); out-of-range columns are simply
    # absent -> exactly the zero-padding semantics of padding=1.
    mask = (wi[None, :, None] == (wo[None, None, :] + dxs[:, None, None] - 1))
    big = jnp.einsum('xiw,yxco->yicwo', mask.astype(w_hwio.dtype), w_hwio)
    return big.reshape(kh, W * Cin, W * Cout).astype(dtype)


def _make_pool_select(W, Cout, dtype=jnp.float32):
    """0/1 selection matrices gathering even / odd column groups for the W-pool."""
    L, Lo = W * Cout, (W // 2) * Cout
    k = jnp.arange(Lo)
    src_even = (k // Cout) * (2 * Cout) + (k % Cout)
    j = jnp.arange(L)
    sel_even = (j[:, None] == src_even[None, :]).astype(dtype)
    sel_odd = (j[:, None] == (src_even + Cout)[None, :]).astype(dtype)
    return jnp.stack([sel_even, sel_odd])                       # (2, L, Lo)


def _fold_bn(conv_b, gamma, beta, mean, var, eps=1e-5):
    s = gamma / jnp.sqrt(var + eps)
    b = (conv_b - mean) * s + beta
    return s, b


def _pack_conv(conv_w_oihw, conv_b, gamma, beta, mean, var, alpha, W):
    Cout = conv_w_oihw.shape[0]
    w_hwio = jnp.transpose(conv_w_oihw, (2, 3, 1, 0))           # (3, 3, Cin, Cout)
    wbig = _make_big_weights(w_hwio, W, _MATMUL_DTYPE)          # (3, W*Cin, W*Cout)
    s, b = _fold_bn(conv_b, gamma, beta, mean, var)
    a = jnp.broadcast_to(jnp.asarray(alpha, jnp.float32), (Cout,))
    p = jnp.stack([jnp.tile(s, W), jnp.tile(b, W), jnp.tile(a, W)])  # (3, W*Cout)
    return wbig, p.astype(jnp.float32)


# ---------------------------------------------------------------------------
# Parameters (deterministic, synthetic)
# ---------------------------------------------------------------------------
def init_params(key, in_channels, out_channels):
    ks = jax.random.split(key, 12)
    p = {}
    p["conv1_w"] = 0.1 * jax.random.normal(ks[0], (out_channels, in_channels, 3, 3), jnp.float32)
    p["conv1_b"] = 0.05 * jax.random.normal(ks[1], (out_channels,), jnp.float32)
    p["bn1_gamma"] = 1.0 + 0.1 * jax.random.normal(ks[2], (out_channels,), jnp.float32)
    p["bn1_beta"] = 0.1 * jax.random.normal(ks[3], (out_channels,), jnp.float32)
    p["bn1_mean"] = 0.1 * jax.random.normal(ks[4], (out_channels,), jnp.float32)
    p["bn1_var"] = 0.5 + jax.random.uniform(ks[5], (out_channels,), jnp.float32)
    p["prelu1_a"] = jnp.float32(0.25)      # PyTorch PReLU default (shared scalar)
    p["conv2_w"] = 0.1 * jax.random.normal(ks[6], (out_channels, out_channels, 3, 3), jnp.float32)
    p["conv2_b"] = 0.05 * jax.random.normal(ks[7], (out_channels,), jnp.float32)
    p["bn2_gamma"] = 1.0 + 0.1 * jax.random.normal(ks[8], (out_channels,), jnp.float32)
    p["bn2_beta"] = 0.1 * jax.random.normal(ks[9], (out_channels,), jnp.float32)
    p["bn2_mean"] = 0.1 * jax.random.normal(ks[10], (out_channels,), jnp.float32)
    p["bn2_var"] = 0.5 + jax.random.uniform(ks[11], (out_channels,), jnp.float32)
    p["prelu2_a"] = jnp.float32(0.25)
    return p


# ---------------------------------------------------------------------------
# DownBlock forward (dim=2, dropout_p=0.0, downsample=True)
# ---------------------------------------------------------------------------
def down_block_forward(x, params):
    """x: NCHW float32 (or NCDHW, handled exactly as the PyTorch 5D path)."""
    x_shape = x.shape
    if x.ndim == 5:
        N5, C5, D5, H5, W5 = x_shape
        x = jnp.transpose(x, (0, 2, 1, 3, 4)).reshape(N5 * D5, C5, H5, W5)

    N, Cin, H, W = x.shape
    # PyTorch MaxPool2d(2,2) floor-mode drops odd trailing rows/cols; the
    # fused kernel assumes even spatial dims (true for the UNet use case).
    assert H % 2 == 0 and W % 2 == 0, "even H, W required for the fused pool"

    Cout = params["conv1_w"].shape[0]
    w1, p1 = _pack_conv(params["conv1_w"], params["conv1_b"], params["bn1_gamma"],
                        params["bn1_beta"], params["bn1_mean"], params["bn1_var"],
                        params["prelu1_a"], W)
    w2, p2 = _pack_conv(params["conv2_w"], params["conv2_b"], params["bn2_gamma"],
                        params["bn2_beta"], params["bn2_mean"], params["bn2_var"],
                        params["prelu2_a"], W)
    sel = _make_pool_select(W, Cout)

    # NCHW -> lane-dense (N, H, W*Cin) slab (channels-last, free reshape).
    x_slab = jnp.transpose(x, (0, 2, 3, 1)).reshape(N, H, W * Cin)

    y_slab, yd_slab = _down_block_pallas(x_slab, w1, p1, w2, p2, sel)

    # Free row-major reinterpretation of the lane-dense slabs back to NHWC.
    y = y_slab.reshape(N, H, W, Cout)
    yd = yd_slab.reshape(N, H // 2, W // 2, Cout)

    out = jnp.transpose(y, (0, 3, 1, 2))         # back to NCHW (module boundary)
    out_d = jnp.transpose(yd, (0, 3, 1, 2))

    if len(x_shape) == 5:
        out = out.reshape(N5, D5, *out.shape[1:]).transpose(0, 2, 1, 3, 4)
        out_d = out_d.reshape(N5, D5, *out_d.shape[1:]).transpose(0, 2, 1, 3, 4)
    return out, out_d


# ---------------------------------------------------------------------------
# Pure-JAX reference (NCHW, f32) for correctness check
# ---------------------------------------------------------------------------
def reference_forward(x, params, eps=1e-5):
    def conv(x, w, b):
        y = lax.conv_general_dilated(x, w, (1, 1), "SAME",
                                     dimension_numbers=("NCHW", "OIHW", "NCHW"))
        return y + b[None, :, None, None]

    def bn(x, g, be, m, v):
        return (x - m[None, :, None, None]) / jnp.sqrt(v + eps)[None, :, None, None] \
               * g[None, :, None, None] + be[None, :, None, None]

    def prelu(x, a):
        return jnp.where(x > 0, x, a * x)

    y = conv(x, params["conv1_w"], params["conv1_b"])
    y = prelu(bn(y, params["bn1_gamma"], params["bn1_beta"],
                 params["bn1_mean"], params["bn1_var"]), params["prelu1_a"])
    y = conv(y, params["conv2_w"], params["conv2_b"])
    y = prelu(bn(y, params["bn2_gamma"], params["bn2_beta"],
                 params["bn2_mean"], params["bn2_var"]), params["prelu2_a"])
    yd = lax.reduce_window(y, -jnp.inf, lax.max,
                           window_dimensions=(1, 1, 2, 2),
                           window_strides=(1, 1, 2, 2), padding="VALID")
    return y, yd


# ---------------------------------------------------------------------------
if __name__ == "__main__":
    key = jax.random.PRNGKey(0)
    k_x, k_p = jax.random.split(key)

    N, Cin, H, W = 2, 4, 16, 16
    Cout = 8
    x = jax.random.normal(k_x, (N, Cin, H, W), jnp.float32)
    params = init_params(k_p, Cin, Cout)

    out, out_d = down_block_forward(x, params)
    out, out_d = jax.block_until_ready((out, out_d))

    assert out.shape == (N, Cout, H, W), out.shape
    assert out_d.shape == (N, Cout, H // 2, W // 2), out_d.shape

    ref_out, ref_out_d = reference_forward(x, params)
    err1 = float(jnp.max(jnp.abs(out - ref_out)))
    err2 = float(jnp.max(jnp.abs(out_d - ref_out_d)))
    # Tolerance accounts for bf16 matmul operands (set _MATMUL_DTYPE=f32 for 2e-3).
    tol = 5e-2 if _MATMUL_DTYPE == jnp.bfloat16 else 2e-3
    assert err1 < tol, f"conv path mismatch: {err1}"
    assert err2 < tol, f"pool path mismatch: {err2}"

    print("KERNEL_OK")
</pallas_src>

<mosaic_0001>
module attributes {stable_mosaic.version = 11 : i64} {
  func.func @down_block_kernel(%arg0: i32, %arg1: memref<2x16x64xf32, #tpu.memory_space<vmem>>, %arg2: memref<3x64x128xbf16, #tpu.memory_space<vmem>>, %arg3: memref<3x128xf32, #tpu.memory_space<vmem>>, %arg4: memref<3x128x128xbf16, #tpu.memory_space<vmem>>, %arg5: memref<3x128xf32, #tpu.memory_space<vmem>>, %arg6: memref<2x128x64xf32, #tpu.memory_space<vmem>>, %arg7: memref<2x16x128xf32, #tpu.memory_space<vmem>>, %arg8: memref<2x8x64xf32, #tpu.memory_space<vmem>>, %arg9: memref<2x18x64xbf16, #tpu.memory_space<vmem>>, %arg10: memref<2x18x128xbf16, #tpu.memory_space<vmem>>) attributes {dimension_semantics = [#tpu.dimension_semantics<parallel>], iteration_bounds = array<i64: 1>, scalar_prefetch = 0 : i64, scratch_operands = 2 : i64, tpu.core_type = #tpu.core_type<tc>, window_params = [{transform_indices = @transform_0, window_bounds = array<i64: 2, 16, 64>}, {pipeline_mode = #tpu.pipeline_mode<synchronous>, transform_indices = @transform_1, window_bounds = array<i64: 3, 64, 128>}, {pipeline_mode = #tpu.pipeline_mode<synchronous>, transform_indices = @transform_2, window_bounds = array<i64: 3, 128>}, {pipeline_mode = #tpu.pipeline_mode<synchronous>, transform_indices = @transform_3, window_bounds = array<i64: 3, 128, 128>}, {pipeline_mode = #tpu.pipeline_mode<synchronous>, transform_indices = @transform_4, window_bounds = array<i64: 3, 128>}, {pipeline_mode = #tpu.pipeline_mode<synchronous>, transform_indices = @transform_5, window_bounds = array<i64: 2, 128, 64>}, {transform_indices = @transform_6, window_bounds = array<i64: 2, 16, 128>}, {transform_indices = @transform_7, window_bounds = array<i64: 2, 8, 64>}]} {
    %cst = arith.constant 0.000000e+00 : bf16
    %0 = vector.broadcast %cst : bf16 to vector<2x1x64xbf16>
    %c0 = arith.constant 0 : index
    %c0_0 = arith.constant 0 : index
    %c0_1 = arith.constant 0 : index
    %1 = vector.load %arg9[%c0, %c0_0, %c0_1] : memref<2x18x64xbf16, #tpu.memory_space<vmem>>, vector<2x1x64xbf16>
    tpu.vector_store %arg9[%c0, %c0_0, %c0_1], %0 {strides = array<i32>} : memref<2x18x64xbf16, #tpu.memory_space<vmem>>, vector<2x1x64xbf16>,
    %cst_2 = arith.constant 0.000000e+00 : bf16
    %2 = vector.broadcast %cst_2 : bf16 to vector<2x1x64xbf16>
    %c0_3 = arith.constant 0 : index
    %c17 = arith.constant 17 : index
    %c0_4 = arith.constant 0 : index
    %3 = vector.load %arg9[%c0_3, %c17, %c0_4] : memref<2x18x64xbf16, #tpu.memory_space<vmem>>, vector<2x1x64xbf16>
    tpu.vector_store %arg9[%c0_3, %c17, %c0_4], %2 {strides = array<i32>} : memref<2x18x64xbf16, #tpu.memory_space<vmem>>, vector<2x1x64xbf16>,
    %cst_5 = arith.constant 0.000000e+00 : bf16
    %4 = vector.broadcast %cst_5 : bf16 to vector<2x1x128xbf16>
    %c0_6 = arith.constant 0 : index
    %c0_7 = arith.constant 0 : index
    %c0_8 = arith.constant 0 : index
    %5 = vector.load %arg10[%c0_6, %c0_7, %c0_8] : memref<2x18x128xbf16, #tpu.memory_space<vmem>>, vector<2x1x128xbf16>
    tpu.vector_store %arg10[%c0_6, %c0_7, %c0_8], %4 {strides = array<i32>} : memref<2x18x128xbf16, #tpu.memory_space<vmem>>, vector<2x1x128xbf16>,
    %cst_9 = arith.constant 0.000000e+00 : bf16
    %6 = vector.broadcast %cst_9 : bf16 to vector<2x1x128xbf16>
    %c0_10 = arith.constant 0 : index
    %c17_11 = arith.constant 17 : index
    %c0_12 = arith.constant 0 : index
    %7 = vector.load %arg10[%c0_10, %c17_11, %c0_12] : memref<2x18x128xbf16, #tpu.memory_space<vmem>>, vector<2x1x128xbf16>
    tpu.vector_store %arg10[%c0_10, %c17_11, %c0_12], %6 {strides = array<i32>} : memref<2x18x128xbf16, #tpu.memory_space<vmem>>, vector<2x1x128xbf16>,
    %c0_13 = arith.constant 0 : index
    %c0_14 = arith.constant 0 : index
    %c0_15 = arith.constant 0 : index
    %8 = vector.load %arg1[%c0_13, %c0_14, %c0_15] : memref<2x16x64xf32, #tpu.memory_space<vmem>>, vector<2x16x64xf32>
    %9 = arith.truncf %8 : vector<2x16x64xf32> to vector<2x16x64xbf16>
    %c0_16 = arith.constant 0 : index
    %c1 = arith.constant 1 : index
    %c0_17 = arith.constant 0 : index
    %10 = vector.load %arg9[%c0_16, %c1, %c0_17] : memref<2x18x64xbf16, #tpu.memory_space<vmem>>, vector<2x16x64xbf16>
    tpu.vector_store %arg9[%c0_16, %c1, %c0_17], %9 {strides = array<i32>} : memref<2x18x64xbf16, #tpu.memory_space<vmem>>, vector<2x16x64xbf16>,
    %c0_18 = arith.constant 0 : index
    %c0_19 = arith.constant 0 : index
    %c0_20 = arith.constant 0 : index
    %11 = vector.load %arg9[%c0_18, %c0_19, %c0_20] : memref<2x18x64xbf16, #tpu.memory_space<vmem>>, vector<2x16x64xbf16>
    %12 = vector.shape_cast %11 : vector<2x16x64xbf16> to vector<32x64xbf16>
    %c0_21 = arith.constant 0 : index
    %c0_22 = arith.constant 0 : index
    %c0_23 = arith.constant 0 : index
    %13 = vector.load %arg2[%c0_21, %c0_22, %c0_23] : memref<3x64x128xbf16, #tpu.memory_space<vmem>>, vector<1x64x128xbf16>
    %14 = vector.shape_cast %13 : vector<1x64x128xbf16> to vector<64x128xbf16>
    %cst_24 = arith.constant dense<0.000000e+00> : vector<32x128xf32>
    %15 = tpu.matmul %12, %14, %cst_24 {dimension_numbers = #tpu.dot_dimension_numbers<[1], [0], [0], [1], [0, 0, 1, 1], [], []>} : vector<32x64xbf16>, vector<64x128xbf16>, vector<32x128xf32> -> vector<32x128xf32>
    %c0_25 = arith.constant 0 : index
    %c1_26 = arith.constant 1 : index
    %c0_27 = arith.constant 0 : index
    %16 = vector.load %arg9[%c0_25, %c1_26, %c0_27] : memref<2x18x64xbf16, #tpu.memory_space<vmem>>, vector<2x16x64xbf16>
    %17 = vector.shape_cast %16 : vector<2x16x64xbf16> to vector<32x64xbf16>
    %c1_28 = arith.constant 1 : index
    %c0_29 = arith.constant 0 : index
    %c0_30 = arith.constant 0 : index
    %18 = vector.load %arg2[%c1_28, %c0_29, %c0_30] : memref<3x64x128xbf16, #tpu.memory_space<vmem>>, vector<1x64x128xbf16>
    %19 = vector.shape_cast %18 : vector<1x64x128xbf16> to vector<64x128xbf16>
    %cst_31 = arith.constant dense<0.000000e+00> : vector<32x128xf32>
    %20 = tpu.matmul %17, %19, %cst_31 {dimension_numbers = #tpu.dot_dimension_numbers<[1], [0], [0], [1], [0, 0, 1, 1], [], []>} : vector<32x64xbf16>, vector<64x128xbf16>, vector<32x128xf32> -> vector<32x128xf32>
    %21 = arith.addf %15, %20 : vector<32x128xf32>
    %c0_32 = arith.constant 0 : index
    %c2 = arith.constant 2 : index
    %c0_33 = arith.constant 0 : index
    %22 = vector.load %arg9[%c0_32, %c2, %c0_33] : memref<2x18x64xbf16, #tpu.memory_space<vmem>>, vector<2x16x64xbf16>
    %23 = vector.shape_cast %22 : vector<2x16x64xbf16> to vector<32x64xbf16>
    %c2_34 = arith.constant 2 : index
    %c0_35 = arith.constant 0 : index
    %c0_36 = arith.constant 0 : index
    %24 = vector.load %arg2[%c2_34, %c0_35, %c0_36] : memref<3x64x128xbf16, #tpu.memory_space<vmem>>, vector<1x64x128xbf16>
    %25 = vector.shape_cast %24 : vector<1x64x128xbf16> to vector<64x128xbf16>
    %cst_37 = arith.constant dense<0.000000e+00> : vector<32x128xf32>
    %26 = tpu.matmul %23, %25, %cst_37 {dimension_numbers = #tpu.dot_dimension_numbers<[1], [0], [0], [1], [0, 0, 1, 1], [], []>} : vector<32x64xbf16>, vector<64x128xbf16>, vector<32x128xf32> -> vector<32x128xf32>
    %27 = arith.addf %21, %26 : vector<32x128xf32>
    %c0_38 = arith.constant 0 : index
    %c0_39 = arith.constant 0 : index
    %28 = vector.load %arg3[%c0_38, %c0_39] : memref<3x128xf32, #tpu.memory_space<vmem>>, vector<1x128xf32>
    %29 = vector.broadcast %28 : vector<1x128xf32> to vector<32x128xf32>
    %30 = arith.mulf %27, %29 : vector<32x128xf32>
    %c1_40 = arith.constant 1 : index
    %c0_41 = arith.constant 0 : index
    %31 = vector.load %arg3[%c1_40, %c0_41] : memref<3x128xf32, #tpu.memory_space<vmem>>, vector<1x128xf32>
    %32 = vector.broadcast %31 : vector<1x128xf32> to vector<32x128xf32>
    %33 = arith.addf %30, %32 : vector<32x128xf32>
    %cst_42 = arith.constant 0.000000e+00 : f32
    %34 = vector.broadcast %cst_42 : f32 to vector<32x128xf32>
    %35 = arith.cmpf ogt, %33, %34 : vector<32x128xf32>
    %c2_43 = arith.constant 2 : index
    %c0_44 = arith.constant 0 : index
    %36 = vector.load %arg3[%c2_43, %c0_44] : memref<3x128xf32, #tpu.memory_space<vmem>>, vector<1x128xf32>
    %37 = vector.broadcast %36 : vector<1x128xf32> to vector<32x128xf32>
    %38 = arith.mulf %37, %33 : vector<32x128xf32>
    %39 = arith.select %35, %33, %38 : vector<32x128xi1>, vector<32x128xf32>
    %40 = vector.shape_cast %39 : vector<32x128xf32> to vector<2x16x128xf32>
    %41 = arith.truncf %40 : vector<2x16x128xf32> to vector<2x16x128xbf16>
    %c0_45 = arith.constant 0 : index
    %c1_46 = arith.constant 1 : index
    %c0_47 = arith.constant 0 : index
    %42 = vector.load %arg10[%c0_45, %c1_46, %c0_47] : memref<2x18x128xbf16, #tpu.memory_space<vmem>>, vector<2x16x128xbf16>
    tpu.vector_store %arg10[%c0_45, %c1_46, %c0_47], %41 {strides = array<i32>} : memref<2x18x128xbf16, #tpu.memory_space<vmem>>, vector<2x16x128xbf16>,
    %c0_48 = arith.constant 0 : index
    %c0_49 = arith.constant 0 : index
    %c0_50 = arith.constant 0 : index
    %43 = vector.load %arg10[%c0_48, %c0_49, %c0_50] : memref<2x18x128xbf16, #tpu.memory_space<vmem>>, vector<2x16x128xbf16>
    %44 = vector.shape_cast %43 : vector<2x16x128xbf16> to vector<32x128xbf16>
    %c0_51 = arith.constant 0 : index
    %c0_52 = arith.constant 0 : index
    %c0_53 = arith.constant 0 : index
    %45 = vector.load %arg4[%c0_51, %c0_52, %c0_53] : memref<3x128x128xbf16, #tpu.memory_space<vmem>>, vector<1x128x128xbf16>
    %46 = vector.shape_cast %45 : vector<1x128x128xbf16> to vector<128x128xbf16>
    %cst_54 = arith.constant dense<0.000000e+00> : vector<32x128xf32>
    %47 = tpu.matmul %44, %46, %cst_54 {dimension_numbers = #tpu.dot_dimension_numbers<[1], [0], [0], [1], [0, 0, 1, 1], [], []>} : vector<32x128xbf16>, vector<128x128xbf16>, vector<32x128xf32> -> vector<32x128xf32>
    %c0_55 = arith.constant 0 : index
    %c1_56 = arith.constant 1 : index
    %c0_57 = arith.constant 0 : index
    %48 = vector.load %arg10[%c0_55, %c1_56, %c0_57] : memref<2x18x128xbf16, #tpu.memory_space<vmem>>, vector<2x16x128xbf16>
    %49 = vector.shape_cast %48 : vector<2x16x128xbf16> to vector<32x128xbf16>
    %c1_58 = arith.constant 1 : index
    %c0_59 = arith.constant 0 : index
    %c0_60 = arith.constant 0 : index
    %50 = vector.load %arg4[%c1_58, %c0_59, %c0_60] : memref<3x128x128xbf16, #tpu.memory_space<vmem>>, vector<1x128x128xbf16>
    %51 = vector.shape_cast %50 : vector<1x128x128xbf16> to vector<128x128xbf16>
    %cst_61 = arith.constant dense<0.000000e+00> : vector<32x128xf32>
    %52 = tpu.matmul %49, %51, %cst_61 {dimension_numbers = #tpu.dot_dimension_numbers<[1], [0], [0], [1], [0, 0, 1, 1], [], []>} : vector<32x128xbf16>, vector<128x128xbf16>, vector<32x128xf32> -> vector<32x128xf32>
    %53 = arith.addf %47, %52 : vector<32x128xf32>
    %c0_62 = arith.constant 0 : index
    %c2_63 = arith.constant 2 : index
    %c0_64 = arith.constant 0 : index
    %54 = vector.load %arg10[%c0_62, %c2_63, %c0_64] : memref<2x18x128xbf16, #tpu.memory_space<vmem>>, vector<2x16x128xbf16>
    %55 = vector.shape_cast %54 : vector<2x16x128xbf16> to vector<32x128xbf16>
    %c2_65 = arith.constant 2 : index
    %c0_66 = arith.constant 0 : index
    %c0_67 = arith.constant 0 : index
    %56 = vector.load %arg4[%c2_65, %c0_66, %c0_67] : memref<3x128x128xbf16, #tpu.memory_space<vmem>>, vector<1x128x128xbf16>
    %57 = vector.shape_cast %56 : vector<1x128x128xbf16> to vector<128x128xbf16>
    %cst_68 = arith.constant dense<0.000000e+00> : vector<32x128xf32>
    %58 = tpu.matmul %55, %57, %cst_68 {dimension_numbers = #tpu.dot_dimension_numbers<[1], [0], [0], [1], [0, 0, 1, 1], [], []>} : vector<32x128xbf16>, vector<128x128xbf16>, vector<32x128xf32> -> vector<32x128xf32>
    %59 = arith.addf %53, %58 : vector<32x128xf32>
    %c0_69 = arith.constant 0 : index
    %c0_70 = arith.constant 0 : index
    %60 = vector.load %arg5[%c0_69, %c0_70] : memref<3x128xf32, #tpu.memory_space<vmem>>, vector<1x128xf32>
    %61 = vector.broadcast %60 : vector<1x128xf32> to vector<32x128xf32>
    %62 = arith.mulf %59, %61 : vector<32x128xf32>
    %c1_71 = arith.constant 1 : index
    %c0_72 = arith.constant 0 : index
    %63 = vector.load %arg5[%c1_71, %c0_72] : memref<3x128xf32, #tpu.memory_space<vmem>>, vector<1x128xf32>
    %64 = vector.broadcast %63 : vector<1x128xf32> to vector<32x128xf32>
    %65 = arith.addf %62, %64 : vector<32x128xf32>
    %cst_73 = arith.constant 0.000000e+00 : f32
    %66 = vector.broadcast %cst_73 : f32 to vector<32x128xf32>
    %67 = arith.cmpf ogt, %65, %66 : vector<32x128xf32>
    %c2_74 = arith.constant 2 : index
    %c0_75 = arith.constant 0 : index
    %68 = vector.load %arg5[%c2_74, %c0_75] : memref<3x128xf32, #tpu.memory_space<vmem>>, vector<1x128xf32>
    %69 = vector.broadcast %68 : vector<1x128xf32> to vector<32x128xf32>
    %70 = arith.mulf %69, %65 : vector<32x128xf32>
    %71 = arith.select %67, %65, %70 : vector<32x128xi1>, vector<32x128xf32>
    %72 = vector.shape_cast %71 : vector<32x128xf32> to vector<2x16x128xf32>
    %c0_76 = arith.constant 0 : index
    %c0_77 = arith.constant 0 : index
    %c0_78 = arith.constant 0 : index
    %73 = vector.load %arg7[%c0_76, %c0_77, %c0_78] : memref<2x16x128xf32, #tpu.memory_space<vmem>>, vector<2x16x128xf32>
    tpu.vector_store %arg7[%c0_76, %c0_77, %c0_78], %72 {strides = array<i32>} : memref<2x16x128xf32, #tpu.memory_space<vmem>>, vector<2x16x128xf32>,
    %74 = vector.shape_cast %71 : vector<32x128xf32> to vector<2x8x2x128xf32>
    %75 = vector.extract_strided_slice %74 {offsets = [0, 0, 0, 0], sizes = [2, 8, 1, 128], strides = [1, 1, 1, 1]} : vector<2x8x2x128xf32> to vector<2x8x1x128xf32>
    %76 = vector.shape_cast %75 : vector<2x8x1x128xf32> to vector<2x8x128xf32>
    %77 = vector.extract_strided_slice %74 {offsets = [0, 0, 1, 0], sizes = [2, 8, 1, 128], strides = [1, 1, 1, 1]} : vector<2x8x2x128xf32> to vector<2x8x1x128xf32>
    %78 = vector.shape_cast %77 : vector<2x8x1x128xf32> to vector<2x8x128xf32>
    %79 = arith.maximumf %76, %78 : vector<2x8x128xf32>
    %80 = vector.shape_cast %79 : vector<2x8x128xf32> to vector<16x128xf32>
    %c0_79 = arith.constant 0 : index
    %c0_80 = arith.constant 0 : index
    %c0_81 = arith.constant 0 : index
    %81 = vector.load %arg6[%c0_79, %c0_80, %c0_81] : memref<2x128x64xf32, #tpu.memory_space<vmem>>, vector<1x128x64xf32>
    %82 = vector.shape_cast %81 : vector<1x128x64xf32> to vector<128x64xf32>
    %cst_82 = arith.constant dense<0.000000e+00> : vector<16x64xf32>
    %83 = tpu.matmul %80, %82, %cst_82 {dimension_numbers = #tpu.dot_dimension_numbers<[1], [0], [0], [1], [0, 0, 1, 1], [], []>} : vector<16x128xf32>, vector<128x64xf32>, vector<16x64xf32> -> vector<16x64xf32>
    %c1_83 = arith.constant 1 : index
    %c0_84 = arith.constant 0 : index
    %c0_85 = arith.constant 0 : index
    %84 = vector.load %arg6[%c1_83, %c0_84, %c0_85] : memref<2x128x64xf32, #tpu.memory_space<vmem>>, vector<1x128x64xf32>
    %85 = vector.shape_cast %84 : vector<1x128x64xf32> to vector<128x64xf32>
    %cst_86 = arith.constant dense<0.000000e+00> : vector<16x64xf32>
    %86 = tpu.matmul %80, %85, %cst_86 {dimension_numbers = #tpu.dot_dimension_numbers<[1], [0], [0], [1], [0, 0, 1, 1], [], []>} : vector<16x128xf32>, vector<128x64xf32>, vector<16x64xf32> -> vector<16x64xf32>
    %87 = arith.maximumf %83, %86 : vector<16x64xf32>
    %88 = vector.shape_cast %87 : vector<16x64xf32> to vector<2x8x64xf32>
    %c0_87 = arith.constant 0 : index
    %c0_88 = arith.constant 0 : index
    %c0_89 = arith.constant 0 : index
    %89 = vector.load %arg8[%c0_87, %c0_88, %c0_89] : memref<2x8x64xf32, #tpu.memory_space<vmem>>, vector<2x8x64xf32>
    tpu.vector_store %arg8[%c0_87, %c0_88, %c0_89], %88 {strides = array<i32>} : memref<2x8x64xf32, #tpu.memory_space<vmem>>, vector<2x8x64xf32>,
    return
  }
  func.func @transform_0(%arg0: i32) -> (i32, i32, i32) {
    %c0_i32 = arith.constant 0 : i32
    %c0_i32_0 = arith.constant 0 : i32
    %c0_i32_1 = arith.constant 0 : i32
    return %arg0, %c0_i32, %c0_i32_0 : i32, i32, i32
  }
  func.func @transform_1(%arg0: i32) -> (i32, i32, i32) {
    %c0_i32 = arith.constant 0 : i32
    %c0_i32_0 = arith.constant 0 : i32
    %c0_i32_1 = arith.constant 0 : i32
    %c0_i32_2 = arith.constant 0 : i32
    return %c0_i32, %c0_i32_0, %c0_i32_1 : i32, i32, i32
  }
  func.func @transform_2(%arg0: i32) -> (i32, i32) {
    %c0_i32 = arith.constant 0 : i32
    %c0_i32_0 = arith.constant 0 : i32
    %c0_i32_1 = arith.constant 0 : i32
    return %c0_i32, %c0_i32_0 : i32, i32
  }
  func.func @transform_3(%arg0: i32) -> (i32, i32, i32) {
    %c0_i32 = arith.constant 0 : i32
    %c0_i32_0 = arith.constant 0 : i32
    %c0_i32_1 = arith.constant 0 : i32
    %c0_i32_2 = arith.constant 0 : i32
    return %c0_i32, %c0_i32_0, %c0_i32_1 : i32, i32, i32
  }
  func.func @transform_4(%arg0: i32) -> (i32, i32) {
    %c0_i32 = arith.constant 0 : i32
    %c0_i32_0 = arith.constant 0 : i32
    %c0_i32_1 = arith.constant 0 : i32
    return %c0_i32, %c0_i32_0 : i32, i32
  }
  func.func @transform_5(%arg0: i32) -> (i32, i32, i32) {
    %c0_i32 = arith.constant 0 : i32
    %c0_i32_0 = arith.constant 0 : i32
    %c0_i32_1 = arith.constant 0 : i32
    %c0_i32_2 = arith.constant 0 : i32
    return %c0_i32, %c0_i32_0, %c0_i32_1 : i32, i32, i32
  }
  func.func @transform_6(%arg0: i32) -> (i32, i32, i32) {
    %c0_i32 = arith.constant 0 : i32
    %c0_i32_0 = arith.constant 0 : i32
    %c0_i32_1 = arith.constant 0 : i32
    return %arg0, %c0_i32, %c0_i32_0 : i32, i32, i32
  }
  func.func @transform_7(%arg0: i32) -> (i32, i32, i32) {
    %c0_i32 = arith.constant 0 : i32
    %c0_i32_0 = arith.constant 0 : i32
    %c0_i32_1 = arith.constant 0 : i32
    return %arg0, %c0_i32, %c0_i32_0 : i32, i32, i32
  }
}

</mosaic_0001>

<bundles_post_ra>
// kernel: tpu_custom_call.1
= control target key start
LH: loop header
LB: loop body
LE: loop exit
PB: predicated region body
PF: predicated region fallthrough
CT: control target
= control target key end

     0   :  { %13 = vsyncpa [#allocation5], 0  ;;  %vm28_vm0 = vcmask 516096   ;;  %vm29_vm1 = vsmask.f32 256  ;;  %vm118_vm6 = vcmask 519168   ;;  %s2671_s0 = inlined_call_operand.vmem [shape: f32[2,16,64], index: 0, kind: input, shape index: {}]   ;;  %s2672_s1 = inlined_call_operand.vmem [shape: bf16[3,64,128], index: 1, kind: input, shape index: {}]   ;;  %s2673_s2 = inlined_call_operand.vmem [shape: f32[3,128], index: 2, kind: input, shape index: {}]   ;;  %s2674_s3 = inlined_call_operand.vmem [shape: bf16[3,128,128], index: 3, kind: input, shape index: {}]   ;;  %s2675_s4 = inlined_call_operand.vmem [shape: f32[3,128], index: 4, kind: input, shape index: {}]   ;;  %s2676_s5 = inlined_call_operand.vmem [shape: f32[2,128,64], index: 5, kind: input, shape index: {}]   ;;  %s2677_s6 = inlined_call_operand.hbm [shape: f32[2,16,128], index: 6, kind: output, shape index: {0}]   ;;  %s2678_s7 = inlined_call_operand.hbm [shape: f32[2,8,64], index: 7, kind: output, shape index: {1}]  }
   0x1   :  { %v2063_v0 = vld [vmem:[%s2672_s1 + $0x20] sm:$0xff]   ;;  %v2064_v1 = vld [vmem:[%s2672_s1 + $0x28] sm:$0xff]   ;;  %v2065_v2 = vld [vmem:[%s2672_s1 + $0x30] sm:$0xff]   ;;  %vm37_vm3 = vsmask.f32 7938  ;;  %vm45_vm9 = vcmask 1040384  }
   0x2   :  { %1812 = vmatprep.subr.bf16.mxu0 %v2063_v0  ;;  %v31_v3 = vld [vmem:[#allocation2] sm:$0x1]  ;;  %v34_v4 = vld [vmem:[#allocation2 + $0xc] sm:$0x1]  ;;  %vm2206_vm2 = vmand %vm28_vm0, %vm29_vm1  ;;  %vm76_vm5 = vsmask.f32 4368 }
   0x3   :  { %1813 = vmatpush3.bf16.msra.mxu0 %v2063_v0  ;;  %v39_v6 = vld [vmem:[#allocation2 + $0x8] sm:$0x1]  ;;  %v42_v7 = vld [vmem:[#allocation2 + $0x14] sm:$0x1]  ;;  %v32_v8 = vsel %vm2206_vm2, 0, %v31_v3  ;;  %v35_v9 = vsel %vm2206_vm2, 0, %v34_v4  ;;  %vm38_vm4 = vmand %vm28_vm0, %vm37_vm3 }
   0x4   :  { %1814 = vmatprep.subr.bf16.mxu0 %v2064_v1  ;;  %v60_v10 = vld [vmem:[%s2671_s0] sm:$0xff]  ;;  %v61_v11 = vld [vmem:[%s2671_s0 + $0x8] sm:$0xff]  ;;  %33 = vst [vmem:[#allocation2] sm:$0x1] %v32_v8  ;;  %36 = vst [vmem:[#allocation2 + $0xc] sm:$0x1] %v35_v9 }
   0x5   :  { %v40_v12 = vsel %vm38_vm4, 0, %v39_v6  ;;  %v43_v13 = vsel %vm38_vm4, 0, %v42_v7  ;;  %v62_v14 = vld [vmem:[%s2671_s0 + $0x10] sm:$0xff]  ;;  %v63_v15 = vld [vmem:[%s2671_s0 + $0x18] sm:$0xff]  ;;  %v1720_v16 = vpack.c.bf16 %v60_v10, %v60_v10  ;;  %v1721_v17 = vpack.c.bf16 %v61_v11, %v61_v11  ;;  %v2233_v29 = vld [vmem:[%s2672_s1] sm:$0xff]  }
   0x6   :  { %v2066_v18 = vld [vmem:[%s2672_s1 + $0x38] sm:$0xff]   ;;  %41 = vst [vmem:[#allocation2 + $0x8] sm:$0x1] %v40_v12  ;;  %44 = vst [vmem:[#allocation2 + $0x14] sm:$0x1] %v43_v13  ;;  %v1722_v19 = vpack.c.bf16 %v62_v14, %v62_v14  ;;  %v1723_v20 = vpack.c.bf16 %v63_v15, %v63_v15  ;;  %vm239_vm14 = vcmask 523264  }
   0x7   :  { %1815 = vmatpush3.bf16.msra.mxu0 %v2064_v1  ;;  %v79_v21 = vshrl.u32 %v1720_v16, 16  ;;  %v82_v22 = vshll.u32 %v1720_v16, 16  ;;  %v87_v23 = vshrl.u32 %v1721_v17, 16  ;;  %v90_v24 = vshll.u32 %v1721_v17, 16  ;;  %vm2236_vm7 = vmor %vm29_vm1, %vm76_vm5  ;;  %v50_v54 = vld [vmem:[#allocation3 + $0xc] sm:$0x1] }
   0x8   :  { %1816 = vmatprep.subr.bf16.mxu0 %v2065_v2  ;;  %v96_v25 = vshrl.u32 %v1722_v19, 16  ;;  %v99_v26 = vshll.u32 %v1722_v19, 16  ;;  %v104_v27 = vshrl.u32 %v1723_v20, 16  ;;  %v107_v28 = vshll.u32 %v1723_v20, 16  ;;  %vm2242_vm8 = vmand %vm118_vm6, %vm37_vm3 }
   0x9   :  { %v81_v31 = vrot.slane %v79_v21, 7  ;;  %v89_v32 = vrot.slane %v87_v23, 7  ;;  %vm149_vm10 = vsmask.f32 3328  ;;  %vm2263_vm11 = vmand %vm45_vm9, %vm29_vm1  ;;  %vm150_vm12 = vsmask.f32 7440 }
   0xa   :  { %v98_v33 = vrot.slane %v96_v25, 7  ;;  %v106_v34 = vrot.slane %v104_v27, 7  ;;  %v51_v56 = vsel %vm2263_vm11, 0, %v50_v54  ;;  %vm2289_vm13 = vmor %vm149_vm10, %vm150_vm12  ;;  %vm390_vm15 = vcmask 1042432  }
   0xb   :  { %1817 = vmatpush3.bf16.msra.mxu0 %v2065_v2  ;;  %v84_v36 = vor.u32 %v82_v22, %v81_v31  ;;  %v85_v37 = vrot.slane %v81_v31, 4  ;;  %v92_v38 = vor.u32 %v90_v24, %v89_v32  ;;  %v94_v39 = vrot.slane %v89_v32, 4  ;;  %v120_v43 = vld [vmem:[#allocation2] sm:$0xf]  ;;  %v128_v44 = vld [vmem:[#allocation2 + $0xc] sm:$0xf] }
   0xc   :  { %1818 = vmatprep.subr.bf16.mxu0 %v2066_v18  ;;  %v101_v40 = vor.u32 %v99_v26, %v98_v33  ;;  %v102_v41 = vrot.slane %v98_v33, 4  ;;  %v109_v42 = vor.u32 %v107_v28, %v106_v34  ;;  %v111_v45 = vrot.slane %v106_v34, 4  ;;  %52 = vst [vmem:[#allocation3 + $0xc] sm:$0x1] %v51_v56 }
   0xd   :  { %v93_v46 = vsel %vm2236_vm7, %v85_v37, %v92_v38  ;;  %v121_v47 = vsel %vm2242_vm8, %v84_v36, %v120_v43  ;;  %v125_v48 = vld [vmem:[#allocation2 + $0x8] sm:$0x1]  ;;  %v132_v49 = vld [vmem:[#allocation2 + $0x14] sm:$0x1]  ;;  %vm391_vm0 = vcmask 1046532  }
   0xe   :  { %v110_v50 = vsel %vm2236_vm7, %v102_v41, %v109_v42  ;;  %122 = vst [vmem:[#allocation2] sm:$0xf] %v121_v47  ;;  %124 = vst.msk [vmem:[#allocation2 + $0x4] sm:$0xf] %vm118_vm6, %v93_v46  ;;  %v126_v51 = vsel %vm2206_vm2, %v94_v39, %v125_v48  ;;  %v129_v52 = vsel %vm2242_vm8, %v101_v40, %v128_v44  ;;  %v2068_v37 = vld [vmem:[%s2672_s1 + $0x8] sm:$0xff]   ;;  %v2069_v43 = vld [vmem:[%s2672_s1 + $0x10] sm:$0xff]  }
   0xf   :  { %1819 = vmatpush3.bf16.msra.mxu0 %v2066_v18  ;;  %v133_v53 = vsel %vm2206_vm2, %v111_v45, %v132_v49  ;;  %127 = vst [vmem:[#allocation2 + $0x8] sm:$0x1] %v126_v51  ;;  %131 = vst.msk [vmem:[#allocation2 + $0x10] sm:$0xf] %vm118_vm6, %v110_v50  ;;  %v2070_v44 = vld [vmem:[%s2672_s1 + $0x18] sm:$0xff]  }
  0x10   :  { %1824 = vmatprep.subr.bf16.mxu0 %v2233_v29  ;;  %130 = vst [vmem:[#allocation2 + $0xc] sm:$0xf] %v129_v52  ;;  %134 = vst [vmem:[#allocation2 + $0x14] sm:$0x1] %v133_v53 }
  0x15   :  { %v135_v57 = vld [vmem:[#allocation2] sm:$0xf]  ;;  %v2269_v58 = vld [vmem:[#allocation2 + $0x4] sm:$0xf] }
  0x16   :  { %v2271_v59 = vld [vmem:[#allocation2 + $0x8] sm:$0x1]  ;;  %v153_v60 = vshrl.u32 %v135_v57, 16  ;;  %v156_v61 = vshll.u32 %v135_v57, 16  ;;  %v162_v62 = vshll.u32 %v2269_v58, 16  ;;  %v166_v63 = vshrl.u32 %v2269_v58, 16 }
  0x17   :  { %v172_v0 = vshll.u32 %v2271_v59, 16  ;;  %v2276_v1 = vld [vmem:[#allocation2 + $0xc] sm:$0xf]  ;;  %v2278_v2 = vld [vmem:[#allocation2 + $0x10] sm:$0xf]  ;;  %v395_v31 = vrot.slane %v2269_v58, 5  ;;  %v1588_v39 = vcombine.low %v135_v57, %v2269_v58 }
  0x18   :  { %v155_v3 = vrot.slane %v153_v60, 4  ;;  %v158_v4 = vrot.slane %v156_v61, 5  ;;  %v164_v5 = vrot.slane %v162_v62, 5  ;;  %v168_v6 = vrot.slane %v166_v63, 4  ;;  %v2280_v7 = vld [vmem:[#allocation2 + $0x14] sm:$0x1] }
  0x19   :  { %v174_v8 = vrot.slane %v172_v0, 5  ;;  %v177_v9 = vshrl.u32 %v2276_v1, 16  ;;  %v180_v10 = vshll.u32 %v2276_v1, 16  ;;  %v186_v11 = vshll.u32 %v2278_v2, 16  ;;  %v384_v25 = vld [vmem:[#allocation2] sm:$0xe] }
  0x1a   :  { %v159_v12 = vor.u32 %v158_v4, %v155_v3  ;;  %v169_v13 = vor.u32 %v168_v6, %v164_v5  ;;  %v190_v14 = vshrl.u32 %v2278_v2, 16  ;;  %v196_v15 = vshll.u32 %v2280_v7, 16 }
  0x1b   :  { %v179_v17 = vrot.slane %v177_v9, 4  ;;  %v182_v18 = vrot.slane %v180_v10, 5  ;;  %v188_v19 = vrot.slane %v186_v11, 5  ;;  %v398_v34 = vrot.slane %v2271_v59, 5 }
  0x1c   :  { %v160_v20 = vrot.slane %v159_v12, 4  ;;  %v170_v21 = vrot.slane %v169_v13, 4  ;;  %v192_v22 = vrot.slane %v190_v14, 4  ;;  %v198_v24 = vrot.slane %v196_v15, 5 }
  0x1d   :  { %v183_v23 = vor.u32 %v182_v18, %v179_v17  ;;  %v1596_v40 = vrot.slane %v384_v25, 9  ;;  %v397_v41 = vrot.slane %v395_v31, 4 }
  0x1e   :  { %v165_v26 = vsel %vm2289_vm13, %v160_v20, %v164_v5  ;;  %v175_v27 = vsel %vm2289_vm13, %v170_v21, %v174_v8  ;;  %v193_v28 = vor.u32 %v192_v22, %v188_v19 }
  0x1f   :  { %v1580_v32 = vcombine.low %v165_v26, %v175_v27  ;;  %v184_v33 = vrot.slane %v183_v23, 4 }
  0x20   :  { %v194_v35 = vrot.slane %v193_v28, 4 }
  0x21   :  { %1820 = vmatprep.mubr.msk.bf16.mxu0 %vm239_vm14, %v1580_v32  ;;  %v189_v36 = vsel %vm2289_vm13, %v184_v33, %v188_v19 }
  0x22   :  { %v199_v38 = vsel %vm2289_vm13, %v194_v35, %v198_v24 }
  0x23   :  { %v1581_v42 = vcombine.low %v189_v36, %v199_v38 }
  0x25   :  { %1821 = vmatmul.mubr.msk.bf16.vlgmr.msra.gmra.mrb[0].mxu0 %vm239_vm14, %v1581_v42 }
  0x26   :  { %1825 = vmatpush3.bf16.msra.mxu0 %v2233_v29  ;;  %1832 = vmatprep.mubr.msk.bf16.mxu0 %vm239_vm14, %v1588_v39 }
  0x27   :  { %1826 = vmatprep.subr.bf16.mxu0 %v2068_v37 }
  0x2a   :  { %1827 = vmatpush3.bf16.msra.mxu0 %v2068_v37 }
  0x2b   :  { %1828 = vmatprep.subr.bf16.mxu0 %v2069_v43 }
  0x2c   :  { %14 = vsyncpa [#allocation7], 0  ;;  %v2072_v29 = vld [vmem:[%s2672_s1 + $0x40] sm:$0xff]   ;;  %v1589_v48 = vcombine.low %v2276_v1, %v2278_v2  ;;  %v2074_v50 = vld [vmem:[%s2672_s1 + $0x48] sm:$0xff]   ;;  %v402_v51 = vrot.slane %v2278_v2, 5  ;;  %v405_v54 = vrot.slane %v2280_v7, 5 }
  0x2d   :  { %vm2319_vm1 = vmor %vm390_vm15, %vm391_vm0  ;;  %v2075_v52 = vld [vmem:[%s2672_s1 + $0x50] sm:$0xff]   ;;  %v385_v53 = vld [vmem:[#allocation2 + $0xc] sm:$0xe]  ;;  %vm1344_vm15 = vcmask 1042434   ;;  %vm1346_vm0 = vcmask 1043459  }
  0x2e   :  { %1829 = vmatpush3.bf16.msra.mxu0 %v2069_v43  ;;  %v396_v46 = vsel %vm2319_vm1, %v1596_v40, %v395_v31  ;;  %v399_v47 = vsel %vm2319_vm1, %v397_v41, %v398_v34  ;;  %v1597_v56 = vrot.slane %v385_v53, 9  ;;  %v404_v57 = vrot.slane %v402_v51, 4  ;;  %v2076_v58 = vld [vmem:[%s2672_s1 + $0x58] sm:$0xff]   ;;  %v2077_v62 = vld [vmem:[%s2674_s3 + $0x40] sm:$0xff]   ;;  %vm53_vm2 = vmand %vm45_vm9, %vm37_vm3 }
  0x2f   :  { %1830 = vmatprep.subr.bf16.mxu0 %v2070_v44  ;;  %v1606_v49 = vcombine.low %v396_v46, %v399_v47  ;;  %v47_v63 = vld [vmem:[#allocation3] sm:$0x1]  ;;  %1848 = vmatprep.subr.bf16.mxu1 %v2077_v62  ;;  %v57_v1 = vld [vmem:[#allocation3 + $0x14] sm:$0x1]  ;;  %v54_v3 = vld [vmem:[#allocation3 + $0x8] sm:$0x1] }
  0x30   :  { %v403_v59 = vsel %vm2319_vm1, %v1597_v56, %v402_v51  ;;  %v406_v60 = vsel %vm2319_vm1, %v404_v57, %v405_v54  ;;  %v48_v0 = vsel %vm2263_vm11, 0, %v47_v63  ;;  %1849 = vmatpush3.bf16.msra.mxu1 %v2077_v62  ;;  %v58_v2 = vsel %vm53_vm2, 0, %v57_v1  ;;  %v2078_v4 = vld [vmem:[%s2674_s3 + $0x48] sm:$0xff]   ;;  %v2079_v6 = vld [vmem:[%s2674_s3 + $0x50] sm:$0xff]   ;;  %v2080_v7 = vld [vmem:[%s2674_s3 + $0x58] sm:$0xff]  }
  0x31   :  { %v1607_v61 = vcombine.low %v403_v59, %v406_v60  ;;  %49 = vst [vmem:[#allocation3] sm:$0x1] %v48_v0  ;;  %59 = vst [vmem:[#allocation3 + $0x14] sm:$0x1] %v58_v2  ;;  %v55_v5 = vsel %vm53_vm2, 0, %v54_v3  ;;  %1850 = vmatprep.subr.bf16.mxu1 %v2078_v4  ;;  %v2081_v8 = vld [vmem:[%s2674_s3 + $0x60] sm:$0xff]  }
  0x32   :  { %1831 = vmatpush3.bf16.msra.mxu0 %v2070_v44  ;;  %56 = vst [vmem:[#allocation3 + $0x8] sm:$0x1] %v55_v5  ;;  %v2082_v9 = vld [vmem:[%s2674_s3 + $0x68] sm:$0xff]   ;;  %v2083_v10 = vld [vmem:[%s2674_s3 + $0x70] sm:$0xff]   ;;  %v2084_v11 = vld [vmem:[%s2674_s3 + $0x78] sm:$0xff]   ;;  %vm592_vm9 = vcmask 1043456  }
  0x33   :  { %1836 = vmatprep.subr.bf16.mxu0 %v2072_v29  ;;  %v2381_v12 = vld [vmem:[%s2674_s3] sm:$0xff]   ;;  %v1247_v14 = vld [vmem:[%s2676_s5 + $0x8] sm:$0xff]  ;;  %v1248_v15 = vld [vmem:[%s2676_s5 + $0x10] sm:$0xff]  ;;  %vm1350_vm2 = vcmask 1045509  }
  0x34   :  { %1851 = vmatpush3.bf16.msra.mxu1 %v2078_v4  ;;  %v1246_v13 = vld [vmem:[%s2676_s5] sm:$0xff]  ;;  %v1249_v18 = vld [vmem:[%s2676_s5 + $0x18] sm:$0xff]  ;;  %vm2406_vm10 = vmand %vm592_vm9, %vm37_vm3 }
  0x35   :  { %1833 = vmatmul.mubr.msk.bf16.vlgmr.msra.gmra.mrb[0].mxu0 %vm239_vm14, %v1589_v48  ;;  %1852 = vmatprep.subr.bf16.mxu1 %v2079_v6  ;;  %v1978_v17 = vpack.c.bf16 %v1247_v14, %v1246_v13  ;;  %v1982_v19 = vpack.c.bf16 %v1249_v18, %v1248_v15  ;;  %v1614_v20 = vld [vmem:[%s2673_s2] ss:$0 sm:$0xff]  ;;  %v1615_v22 = vld [vmem:[%s2673_s2 + $0x1] ss:$0 sm:$0xff]  ;;  %v1616_v25 = vld [vmem:[%s2673_s2 + $0x2] ss:$0 sm:$0xff] }
  0x36   :  { %1837 = vmatpush3.bf16.msra.mxu0 %v2072_v29  ;;  %1844 = vmatprep.mubr.msk.bf16.mxu0 %vm239_vm14, %v1606_v49  ;;  %v601_v56 = vld [vmem:[#allocation3 + $0xc] sm:$0xf]  ;;  %v2088_v16 = vld [vmem:[%s2674_s3 + $0x10] sm:$0xff]   ;;  %v2098_v45 = vld [vmem:[%s2674_s3 + $0x98] sm:$0xff]  }
  0x37   :  { %1838 = vmatprep.subr.bf16.mxu0 %v2074_v50 }
  0x38   :  { %1853 = vmatpush3.bf16.msra.mxu1 %v2079_v6  ;;  %v605_v1 = vld [vmem:[#allocation3 + $0x14] sm:$0x1] }
  0x39   :  { %1854 = vmatprep.subr.bf16.mxu1 %v2080_v7 }
  0x3a   :  { %1839 = vmatpush3.bf16.msra.mxu0 %v2074_v50 }
  0x3b   :  { %1840 = vmatprep.subr.bf16.mxu0 %v2075_v52 }
  0x3c   :  { %1855 = vmatpush3.bf16.msra.mxu1 %v2080_v7 }
  0x3d   :  { %1856 = vmatprep.subr.bf16.mxu1 %v2081_v8 }
  0x3e   :  { %1841 = vmatpush3.bf16.msra.mxu0 %v2075_v52 }
  0x3f   :  { %1842 = vmatprep.subr.bf16.mxu0 %v2076_v58 }
  0x40   :  { %1857 = vmatpush3.bf16.msra.mxu1 %v2081_v8  ;;  %v598_v8 = vld [vmem:[#allocation3 + $0x8] sm:$0x1] }
  0x41   :  { %1858 = vmatprep.subr.bf16.mxu1 %v2082_v9 }
  0x42   :  { %1843 = vmatpush3.bf16.msra.mxu0 %v2076_v58 }
  0x43   :  { %1979 = vmatprep.subr.bf16.mxu0 %v1978_v17 }
  0x44   :  { %1859 = vmatpush3.bf16.msra.mxu1 %v2082_v9 }
  0x45   :  { %1845 = vmatmul.mubr.msk.bf16.vlgmr.msra.gmra.mrb[0].mxu0 %vm239_vm14, %v1607_v61  ;;  %1860 = vmatprep.subr.bf16.mxu1 %v2083_v10  ;;  %v594_v61 = vld [vmem:[#allocation3] sm:$0xf] }
  0x46   :  { %1981 = vmatpush3.bf16.msra.mxu0 %v1978_v17 }
  0x47   :  { %1983 = vmatprep.subr.bf16.mxu0 %v1982_v19 }
  0x48   :  { %1861 = vmatpush3.bf16.msra.mxu1 %v2083_v10 }
  0x49   :  { %1862 = vmatprep.subr.bf16.mxu1 %v2084_v11 }
  0x4a   :  { %1985 = vmatpush3.bf16.msra.mxu0 %v1982_v19 }
  0x4c   :  { %1863 = vmatpush3.bf16.msra.mxu1 %v2084_v11 }
  0x4d   :  { %1868 = vmatprep.subr.bf16.mxu1 %v2381_v12 }
 0x118   :  { %v1846_v21 = vpop.f32.mrb[0].mxu0 }
 0x119   :  { %v512_v23 = vmul.f32 %v1846_v21, %v1614_v20  ;;  %v486_v24 = vpop.f32.mrb[1].mxu0 }
 0x11a   :  { %v510_v26 = vmul.f32 %v1614_v20, %v486_v24  ;;  %v1847_v27 = vpop.f32.mrb[2].mxu0 }
 0x11b   :  { %v521_v28 = vadd.f32 %v1615_v22, %v512_v23  ;;  %v513_v31 = vmul.f32 %v1847_v27, %v1614_v20  ;;  %v489_v32 = vpop.f32.mrb[3].mxu0 }
 0x11c   :  { %v519_v33 = vadd.f32 %v1615_v22, %v510_v26  ;;  %v511_v34 = vmul.f32 %v1614_v20, %v489_v32 }
 0x11d   :  { %vm525_vm4 = vcmp.gt.f32.partialorder %v521_v28, 0.0  ;;  %v534_v35 = vmul.f32 %v1616_v25, %v521_v28  ;;  %v522_v36 = vadd.f32 %v1615_v22, %v513_v31 }
 0x11e   :  { %vm523_vm5 = vcmp.gt.f32.partialorder %v519_v33, 0.0  ;;  %v532_v37 = vmul.f32 %v1616_v25, %v519_v33  ;;  %v520_v38 = vadd.f32 %v1615_v22, %v511_v34 }
 0x11f   :  { %v538_v39 = vsel %vm525_vm4, %v521_v28, %v534_v35  ;;  %vm526_vm6 = vcmp.gt.f32.partialorder %v522_v36, 0.0  ;;  %v535_v40 = vmul.f32 %v1616_v25, %v522_v36  ;;  %vm1352_vm4 = vcmask 1046534  }
 0x120   :  { %v1726_v41 = vpack.c.bf16 %v538_v39, %v538_v39  ;;  %v536_v42 = vsel %vm523_vm5, %v519_v33, %v532_v37  ;;  %vm524_vm8 = vcmp.gt.f32.partialorder %v520_v38, 0.0  ;;  %v533_v43 = vmul.f32 %v1616_v25, %v520_v38 }
 0x121   :  { %v1724_v44 = vpack.c.bf16 %v536_v42, %v536_v42  ;;  %v539_v29 = vsel %vm526_vm6, %v522_v36, %v535_v40  ;;  %vm1354_vm5 = vcmask 1047559  }
 0x122   :  { %v570_v46 = vshrl.u32 %v1726_v41, 16  ;;  %v1727_v47 = vpack.c.bf16 %v539_v29, %v539_v29  ;;  %v537_v48 = vsel %vm524_vm8, %v520_v38, %v533_v43  ;;  %v573_v52 = vshll.u32 %v1726_v41, 16 }
 0x123   :  { %v553_v49 = vshrl.u32 %v1724_v44, 16  ;;  %v1725_v50 = vpack.c.bf16 %v537_v48, %v537_v48  ;;  %v556_v58 = vshll.u32 %v1724_v44, 16 }
 0x124   :  { %v572_v51 = vrot.slane %v570_v46, 7  ;;  %v578_v53 = vshrl.u32 %v1727_v47, 16  ;;  %v581_v63 = vshll.u32 %v1727_v47, 16 }
 0x125   :  { %v555_v57 = vrot.slane %v553_v49, 7  ;;  %v561_v59 = vshrl.u32 %v1725_v50, 16  ;;  %v564_v3 = vshll.u32 %v1725_v50, 16 }
 0x126   :  { %v575_v60 = vor.u32 %v573_v52, %v572_v51  ;;  %v580_v62 = vrot.slane %v578_v53, 7  ;;  %v576_v4 = vrot.slane %v572_v51, 4 }
 0x127   :  { %v558_v0 = vor.u32 %v556_v58, %v555_v57  ;;  %v563_v2 = vrot.slane %v561_v59, 7  ;;  %v559_v9 = vrot.slane %v555_v57, 4 }
 0x128   :  { %v602_v5 = vsel %vm2406_vm10, %v575_v60, %v601_v56  ;;  %v583_v6 = vor.u32 %v581_v63, %v580_v62  ;;  %v585_v7 = vrot.slane %v580_v62, 4 }
 0x129   :  { %603 = vst [vmem:[#allocation3 + $0xc] sm:$0xf] %v602_v5  ;;  %v595_v10 = vsel %vm2406_vm10, %v558_v0, %v594_v61  ;;  %v566_v11 = vor.u32 %v564_v3, %v563_v2  ;;  %v568_v13 = vrot.slane %v563_v2, 4 }
 0x12a   :  { %596 = vst [vmem:[#allocation3] sm:$0xf] %v595_v10  ;;  %v584_v14 = vsel %vm2236_vm7, %v576_v4, %v583_v6  ;;  %v606_v15 = vsel %vm2263_vm11, %v585_v7, %v605_v1  ;;  %v2087_v1 = vld [vmem:[%s2674_s3 + $0x8] sm:$0xff]   ;;  %v2089_v6 = vld [vmem:[%s2674_s3 + $0x18] sm:$0xff]   ;;  %v2090_v7 = vld [vmem:[%s2674_s3 + $0x20] sm:$0xff]  }
 0x12b   :  { %604 = vst [vmem:[#allocation3 + $0x10] sm:$0xf] %v584_v14  ;;  %607 = vst [vmem:[#allocation3 + $0x14] sm:$0x1] %v606_v15  ;;  %v567_v17 = vsel %vm2236_vm7, %v559_v9, %v566_v11  ;;  %v599_v18 = vsel %vm2263_vm11, %v568_v13, %v598_v8  ;;  %v2092_v8 = vld [vmem:[%s2674_s3 + $0x30] sm:$0xff]   ;;  %v2093_v10 = vld [vmem:[%s2674_s3 + $0x38] sm:$0xff]  }
 0x12c   :  { %597 = vst [vmem:[#allocation3 + $0x4] sm:$0xf] %v567_v17  ;;  %600 = vst [vmem:[#allocation3 + $0x8] sm:$0x1] %v599_v18  ;;  %v2095_v15 = vld [vmem:[%s2674_s3 + $0x80] sm:$0xff]  }
 0x130   :  { %v2422_v19 = vld [vmem:[#allocation3 + $0xc] sm:$0xf] }
 0x131   :  { %v608_v20 = vld [vmem:[#allocation3] sm:$0xf]  ;;  %v655_v21 = vshrl.u32 %v2422_v19, 16  ;;  %v658_v22 = vshll.u32 %v2422_v19, 16  ;;  %v910_v51 = vld [vmem:[#allocation3 + $0xc] sm:$0xe] }
 0x132   :  { %v631_v23 = vshrl.u32 %v608_v20, 16  ;;  %v634_v24 = vshll.u32 %v608_v20, 16  ;;  %v2426_v25 = vld [vmem:[#allocation3 + $0x10] sm:$0xf]  ;;  %v629_v35 = vld [vmem:[#allocation3 + $0x14] sm:$0x1] }
 0x133   :  { %v2428_v26 = vld [vmem:[#allocation3 + $0x4] sm:$0xf]  ;;  %v2430_v30 = vld [vmem:[#allocation3 + $0x8] sm:$0x1]  ;;  %v657_v27 = vrot.slane %v655_v21, 4  ;;  %v660_v55 = vrot.slane %v658_v22, 5 }
 0x134   :  { %v633_v28 = vrot.slane %v631_v23, 4  ;;  %v636_v31 = vrot.slane %v634_v24, 5  ;;  %v640_v32 = vshll.u32 %v2428_v26, 16  ;;  %v644_v33 = vshrl.u32 %v2428_v26, 16  ;;  %v909_v13 = vld [vmem:[#allocation3] sm:$0xe] }
 0x135   :  { %v650_v34 = vshll.u32 %v2430_v30, 16  ;;  %v661_v36 = vor.u32 %v660_v55, %v657_v27  ;;  %v664_v37 = vshll.u32 %v2426_v25, 16  ;;  %v668_v41 = vshrl.u32 %v2426_v25, 16  ;;  %v2096_v22 = vld [vmem:[%s2674_s3 + $0x88] sm:$0xff]   ;;  %v2097_v24 = vld [vmem:[%s2674_s3 + $0x90] sm:$0xff]   ;;  %v1250_v27 = vld [vmem:[%s2676_s5 + $0x20] sm:$0xff] }
 0x136   :  { %v637_v38 = vor.u32 %v636_v31, %v633_v28  ;;  %v642_v39 = vrot.slane %v640_v32, 5  ;;  %v646_v40 = vrot.slane %v644_v33, 4  ;;  %v674_v46 = vshll.u32 %v629_v35, 16  ;;  %v1251_v55 = vld [vmem:[%s2676_s5 + $0x28] sm:$0xff]  ;;  %v1252_v31 = vld [vmem:[%s2676_s5 + $0x30] sm:$0xff]  ;;  %v1253_v32 = vld [vmem:[%s2676_s5 + $0x38] sm:$0xff] }
 0x137   :  { %v666_v42 = vrot.slane %v664_v37, 5  ;;  %v670_v29 = vrot.slane %v668_v41, 4  ;;  %v652_v48 = vrot.slane %v650_v34, 5  ;;  %v662_v49 = vrot.slane %v661_v36, 4  ;;  %v1254_v34 = vld [vmem:[%s2676_s5 + $0x40] sm:$0xff]  ;;  %v1256_v37 = vld [vmem:[%s2676_s5 + $0x50] sm:$0xff] }
 0x138   :  { %v638_v43 = vrot.slane %v637_v38, 4  ;;  %v647_v44 = vor.u32 %v646_v40, %v642_v39  ;;  %v924_v52 = vrot.slane %v2426_v25, 5  ;;  %v676_v57 = vrot.slane %v674_v46, 5  ;;  %v1257_v38 = vld [vmem:[%s2676_s5 + $0x58] sm:$0xff]  ;;  %v1258_v40 = vld [vmem:[%s2676_s5 + $0x60] sm:$0xff]  ;;  %v1259_v41 = vld [vmem:[%s2676_s5 + $0x68] sm:$0xff] }
 0x139   :  { %v671_v50 = vor.u32 %v670_v29, %v666_v42  ;;  %v927_v59 = vrot.slane %v629_v35, 5  ;;  %v1658_v60 = vrot.slane %v910_v51, 9  ;;  %v667_v62 = vsel %vm2289_vm13, %v662_v49, %v666_v42  ;;  %v1255_v35 = vld [vmem:[%s2676_s5 + $0x48] sm:$0xff]  ;;  %v1260_v42 = vld [vmem:[%s2676_s5 + $0x70] sm:$0xff]  ;;  %v1704_v46 = vld [vmem:[%s2676_s5 + $0x80] sm:$0xff] }
 0x13a   :  { %v648_v47 = vrot.slane %v647_v44, 4  ;;  %v643_v53 = vsel %vm2289_vm13, %v638_v43, %v642_v39  ;;  %v926_v61 = vrot.slane %v924_v52, 4  ;;  %v1647_v4 = vcombine.low %v608_v20, %v2428_v26  ;;  %v1261_v44 = vld [vmem:[%s2676_s5 + $0x78] sm:$0xff] }
 0x13b   :  { %v672_v56 = vrot.slane %v671_v50, 4  ;;  %v925_v2 = vsel %vm2319_vm1, %v1658_v60, %v924_v52  ;;  %v917_v9 = vrot.slane %v2428_v26, 5  ;;  %v920_v14 = vrot.slane %v2430_v30, 5  ;;  %v2101_v26 = vld [vmem:[%s2674_s3 + $0xb0] sm:$0xff]   ;;  %v2102_v30 = vld [vmem:[%s2674_s3 + $0xb8] sm:$0xff]  }
 0x13c   :  { %v653_v54 = vsel %vm2289_vm13, %v648_v47, %v652_v48  ;;  %v928_v3 = vsel %vm2319_vm1, %v926_v61, %v927_v59  ;;  %v1657_v17 = vrot.slane %v909_v13, 9  ;;  %v1648_v20 = vcombine.low %v2422_v19, %v2426_v25  ;;  %v2099_v19 = vld [vmem:[%s2674_s3 + $0xa0] sm:$0xff]   ;;  %v2100_v25 = vld [vmem:[%s2674_s3 + $0xa8] sm:$0xff]  }
 0x13d   :  { %v1637_v58 = vcombine.low %v643_v53, %v653_v54  ;;  %v677_v63 = vsel %vm2289_vm13, %v672_v56, %v676_v57  ;;  %v1676_v5 = vcombine.low %v925_v2, %v928_v3  ;;  %v919_v11 = vrot.slane %v917_v9, 4  ;;  %v1705_v47 = vld [vmem:[%s2676_s5 + $0x88] sm:$0xff]  ;;  %v1685_v52 = vld [vmem:[%s2675_s4] ss:$0 sm:$0xff]  ;;  %v1686_v54 = vld [vmem:[%s2675_s4 + $0x1] ss:$0 sm:$0xff] }
 0x13e   :  { %v1638_v0 = vcombine.low %v667_v62, %v677_v63  ;;  %v918_v21 = vsel %vm2319_vm1, %v1657_v17, %v917_v9  ;;  %v1986_v28 = vpack.c.bf16 %v1251_v55, %v1250_v27  ;;  %v1990_v33 = vpack.c.bf16 %v1253_v32, %v1252_v31  ;;  %v1687_v60 = vld [vmem:[%s2675_s4 + $0x2] ss:$0 sm:$0xff]  ;;  %s2152_s4 = smov [#allocation4]  }
 0x13f   :  { %1864 = vmatprep.mubr.bf16.mxu1 %v1637_v58  ;;  %v921_v18 = vsel %vm2319_vm1, %v919_v11, %v920_v14  ;;  %v1994_v36 = vpack.c.bf16 %v1255_v35, %v1254_v34  ;;  %v1998_v39 = vpack.c.bf16 %v1257_v38, %v1256_v37  ;;  %v2002_v43 = vpack.c.bf16 %v1259_v41, %v1258_v40  ;;  %s1541_s23 = sshll.u32 %s2152_s4, 4  ;;  %s1542_s23 = int_to_ptr.vmem [resolvable:$true] %s1541_s23 }
 0x140   :  { %1865 = vmatmul.mubr.bf16.vlgmr.msra.gmra.mrb[0].mxu1 %v1638_v0  ;;  %v1675_v23 = vcombine.low %v918_v21, %v921_v18  ;;  %1987 = vmatprep.subr.bf16.mxu0 %v1986_v28  ;;  %v2006_v29 = vpack.c.bf16 %v1261_v44, %v1260_v42  ;;  %v2547_v48 = vpack.c.bf16 %v1705_v47, %v1704_v46  ;;  %v2151_v49 = vmov 1983009808   ;;  %s2103_s24 = scalar_lea.vmem %s1542_s23, 512  ;;  %p2108_p1 = scmp.lt.s32.totalorder %s1542_s23, %s1542_s23 }
 0x141   :  { %1869 = vmatpush3.bf16.msra.mxu1 %v2381_v12  ;;  %1884 = vmatprep.mubr.bf16.mxu1 %v1647_v4  ;;  %v2091_v12 = vld [vmem:[%s2674_s3 + $0x28] sm:$0xff]   ;;  %v1100_v50 = vunpack.c.l.s4 %v2151_v49  ;;  %v1102_v51 = vlaneseq  ;;  %vm1342_vm13 = vcmask 1041409   ;;  %vm1348_vm1 = vcmask 1044484   ;;  %p2104_p0 = scmp.ne.s32.totalorder %s1542_s23, %s2103_s24  ;;  %p2109_p2 = scmp.lt.s32.totalorder %s2103_s24, %s2103_s24 }
 0x142   :  { %1870 = vmatprep.subr.bf16.mxu1 %v2087_v1  ;;  %1989 = vmatpush3.bf16.msra.mxu0 %v1986_v28 }
 0x143   :  { %1991 = vmatprep.subr.bf16.mxu0 %v1990_v33  ;;  %v1101_v56 = vunpack.c.0.s8 %v1100_v50  ;;  %v1103_v57 = vshrl.u32 %v1102_v51, 7  ;;  %p2110_p3 = por %p2109_p2, %p2108_p1 }
 0x145   :  { %1871 = vmatpush3.bf16.msra.mxu1 %v2087_v1  ;;  %v2559_v2 = vsub.s32 %v1101_v56, %v1103_v57  ;;  %v2562_v13 = vsub.s32 0, %v1103_v57  ;;  %p2111_p4 = pnand %p2110_p3, %p2104_p0 }
 0x146   :  { %1872 = vmatprep.subr.bf16.mxu1 %v2088_v16  ;;  %1993 = vmatpush3.bf16.msra.mxu0 %v1990_v33 }
 0x147   :  { %1995 = vmatprep.subr.bf16.mxu0 %v1994_v36 }
 0x149   :  { %1873 = vmatpush3.bf16.msra.mxu1 %v2088_v16 }
 0x14a   :  { %1874 = vmatprep.subr.bf16.mxu1 %v2089_v6  ;;  %1997 = vmatpush3.bf16.msra.mxu0 %v1994_v36 }
 0x14b   :  { %1999 = vmatprep.subr.bf16.mxu0 %v1998_v39 }
 0x14d   :  { %1875 = vmatpush3.bf16.msra.mxu1 %v2089_v6 }
 0x14e   :  { %1876 = vmatprep.subr.bf16.mxu1 %v2090_v7  ;;  %2001 = vmatpush3.bf16.msra.mxu0 %v1998_v39 }
 0x14f   :  { %2003 = vmatprep.subr.bf16.mxu0 %v2002_v43 }
 0x151   :  { %1877 = vmatpush3.bf16.msra.mxu1 %v2090_v7 }
 0x152   :  { %1878 = vmatprep.subr.bf16.mxu1 %v2091_v12  ;;  %2005 = vmatpush3.bf16.msra.mxu0 %v2002_v43 }
 0x153   :  { %2007 = vmatprep.subr.bf16.mxu0 %v2006_v29 }
 0x155   :  { %1879 = vmatpush3.bf16.msra.mxu1 %v2091_v12 }
 0x156   :  { %1880 = vmatprep.subr.bf16.mxu1 %v2092_v8  ;;  %2009 = vmatpush3.bf16.msra.mxu0 %v2006_v29 }
 0x157   :  { %2011 = vmatprep.subr.bf16.mxu0 %v2547_v48 }
 0x159   :  { %1881 = vmatpush3.bf16.msra.mxu1 %v2092_v8 }
 0x15a   :  { %1882 = vmatprep.subr.bf16.mxu1 %v2093_v10 }
 0x15d   :  { %1883 = vmatpush3.bf16.msra.mxu1 %v2093_v10 }
 0x15e   :  { %1888 = vmatprep.subr.bf16.mxu1 %v2095_v15 }
 0x160   :  { %1885 = vmatmul.mubr.bf16.vlgmr.msra.gmra.mrb[0].mxu1 %v1648_v20 }
 0x161   :  { %1889 = vmatpush3.bf16.msra.mxu1 %v2095_v15  ;;  %1904 = vmatprep.mubr.bf16.mxu1 %v1675_v23 }
 0x162   :  { %1890 = vmatprep.subr.bf16.mxu1 %v2096_v22 }
 0x165   :  { %1891 = vmatpush3.bf16.msra.mxu1 %v2096_v22 }
 0x166   :  { %1892 = vmatprep.subr.bf16.mxu1 %v2097_v24 }
 0x169   :  { %1893 = vmatpush3.bf16.msra.mxu1 %v2097_v24 }
 0x16a   :  { %1894 = vmatprep.subr.bf16.mxu1 %v2098_v45 }
 0x16d   :  { %1895 = vmatpush3.bf16.msra.mxu1 %v2098_v45 }
 0x16e   :  { %1896 = vmatprep.subr.bf16.mxu1 %v2099_v19 }
 0x171   :  { %1897 = vmatpush3.bf16.msra.mxu1 %v2099_v19 }
 0x172   :  { %1898 = vmatprep.subr.bf16.mxu1 %v2100_v25 }
 0x175   :  { %1899 = vmatpush3.bf16.msra.mxu1 %v2100_v25 }
 0x176   :  { %1900 = vmatprep.subr.bf16.mxu1 %v2101_v26 }
 0x179   :  { %1901 = vmatpush3.bf16.msra.mxu1 %v2101_v26 }
 0x17a   :  { %1902 = vmatprep.subr.bf16.mxu1 %v2102_v30 }
 0x17d   :  { %1903 = vmatpush3.bf16.msra.mxu1 %v2102_v30 }
 0x180   :  { %1905 = vmatmul.mubr.bf16.vlgmr.msra.gmra.mrb[0].mxu1 %v1676_v5 }
 0x253   :  { %v1906_v53 = vpop.f32.mrb[0].mxu1 }
 0x254   :  { %v1062_v58 = vmul.f32 %v1906_v53, %v1685_v52  ;;  %v1036_v59 = vpop.f32.mrb[1].mxu1 }
 0x255   :  { %v1060_v61 = vmul.f32 %v1685_v52, %v1036_v59  ;;  %v1907_v62 = vpop.f32.mrb[2].mxu1 }
 0x256   :  { %v1071_v63 = vadd.f32 %v1686_v54, %v1062_v58  ;;  %v1063_v0 = vmul.f32 %v1907_v62, %v1685_v52  ;;  %v1039_v1 = vpop.f32.mrb[3].mxu1 }
 0x257   :  { %v1069_v3 = vadd.f32 %v1686_v54, %v1060_v61  ;;  %v1061_v4 = vmul.f32 %v1685_v52, %v1039_v1 }
 0x258   :  { %vm1075_vm3 = vcmp.gt.f32.partialorder %v1071_v63, 0.0  ;;  %v1084_v5 = vmul.f32 %v1687_v60, %v1071_v63  ;;  %v1072_v16 = vadd.f32 %v1686_v54, %v1063_v0 }
 0x259   :  { %vm1073_vm7 = vcmp.gt.f32.partialorder %v1069_v3, 0.0  ;;  %v1082_v6 = vmul.f32 %v1687_v60, %v1069_v3  ;;  %v1070_v7 = vadd.f32 %v1686_v54, %v1061_v4 }
 0x25a   :  { %v1088_v12 = vsel %vm1075_vm3, %v1071_v63, %v1084_v5  ;;  %vm1076_vm11 = vcmp.gt.f32.partialorder %v1072_v16, 0.0  ;;  %v1085_v8 = vmul.f32 %v1687_v60, %v1072_v16 }
 0x25b   :  { %1092 = vst [vmem:[#allocation4 + $0x10] sm:$0xff] %v1088_v12  ;;  %v1132_v9 = vcombine.high %v1088_v12, %v1088_v12  ;;  %v1139_v10 = vrot.slane %v1088_v12, %v2559_v2  ;;  %v1086_v11 = vsel %vm1073_vm7, %v1069_v3, %v1082_v6  ;;  %v1083_v22 = vmul.f32 %v1687_v60, %v1070_v7 }
 0x25c   :  { %1090 = vst [vmem:[#allocation4] sm:$0xff] %v1086_v11  ;;  %v1098_v14 = vcombine.high %v1086_v11, %v1086_v11  ;;  %v1105_v15 = vrot.slane %v1086_v11, %v2559_v2  ;;  %v1089_v17 = vsel %vm1076_vm11, %v1072_v16, %v1085_v8  ;;  %vm1074_vm12 = vcmp.gt.f32.partialorder %v1070_v7, 0.0 }
 0x25d   :  { %v1146_v18 = vrot.slane %v1132_v9, %v2559_v2  ;;  %v1147_v20 = vcombine.high %v1139_v10, %v1139_v10  ;;  %v1696_v21 = vrot.slane %v1139_v10, 9  ;;  %1093 = vst [vmem:[#allocation4 + $0x18] sm:$0xff] %v1089_v17  ;;  %v1149_v19 = vcombine.high %v1089_v17, %v1089_v17 }
 0x25e   :  { %v1112_v23 = vrot.slane %v1098_v14, %v2559_v2  ;;  %v1113_v24 = vcombine.high %v1105_v15, %v1105_v15  ;;  %v1688_v45 = vrot.slane %v1105_v15, 9  ;;  %v1156_v27 = vrot.slane %v1089_v17, %v2559_v2 }
 0x25f   :  { %v1148_v25 = vcombine.high %v1146_v18, %v1146_v18  ;;  %v1697_v26 = vrot.slane %v1147_v20, 9  ;;  %v1698_v30 = vrot.slane %v1146_v18, 9  ;;  %v1238_v37 = vmax.f32 %v1139_v10, %v1696_v21 }
 0x260   :  { %v1114_v55 = vcombine.high %v1112_v23, %v1112_v23  ;;  %v1689_v28 = vrot.slane %v1113_v24, 9  ;;  %v1690_v31 = vrot.slane %v1112_v23, 9  ;;  %v1230_v32 = vmax.f32 %v1105_v15, %v1688_v45 }
 0x261   :  { %v1699_v33 = vrot.slane %v1148_v25, 9  ;;  %v1239_v38 = vmax.f32 %v1147_v20, %v1697_v26  ;;  %v1240_v39 = vmax.f32 %v1146_v18, %v1698_v30  ;;  %v1163_v40 = vrot.slane %v1149_v19, %v2559_v2 }
 0x262   :  { %v1691_v34 = vrot.slane %v1114_v55, 9  ;;  %v1231_v35 = vmax.f32 %v1113_v24, %v1689_v28  ;;  %v1232_v36 = vmax.f32 %v1112_v23, %v1690_v31  ;;  %v1281_v41 = vrot.slane %v1230_v32, %v2562_v13 }
 0x263   :  { %v1164_v43 = vcombine.high %v1156_v27, %v1156_v27  ;;  %v1087_v44 = vsel %vm1074_vm12, %v1070_v7, %v1083_v22  ;;  %v1241_v50 = vmax.f32 %v1148_v25, %v1699_v33  ;;  %v1700_v51 = vrot.slane %v1156_v27, 9 }
 0x264   :  { %v1285_v42 = vrot.slane %v1231_v35, %v2562_v13  ;;  %1091 = vst [vmem:[#allocation4 + $0x8] sm:$0xff] %v1087_v44  ;;  %v1115_v29 = vcombine.high %v1087_v44, %v1087_v44  ;;  %v1122_v46 = vrot.slane %v1087_v44, %v2559_v2  ;;  %v1233_v47 = vmax.f32 %v1114_v55, %v1691_v34  ;;  %v1707_v55 = vld [vmem:[%s2676_s5 + $0x98] sm:$0xff] }
 0x265   :  { %v1289_v49 = vrot.slane %v1232_v36, %v2562_v13  ;;  %v1165_v53 = vcombine.high %v1163_v40, %v1163_v40  ;;  %v1317_v59 = vrot.slane %v1239_v38, %v2562_v13  ;;  %v1701_v60 = vrot.slane %v1164_v43, 9  ;;  %v1708_v38 = vld [vmem:[%s2676_s5 + $0xa0] sm:$0xff] }
 0x266   :  { %v1343_v52 = vsel %vm1342_vm13, %v1285_v42, %v1281_v41  ;;  %v1129_v54 = vrot.slane %v1115_v29, %v2559_v2  ;;  %v1130_v56 = vcombine.high %v1122_v46, %v1122_v46  ;;  %v1692_v57 = vrot.slane %v1122_v46, 9  ;;  %v1711_v41 = vld [vmem:[%s2676_s5 + $0xb8] sm:$0xff]  ;;  %v1714_v29 = vld [vmem:[%s2676_s5 + $0xd0] sm:$0xff] }
 0x267   :  { %v1293_v58 = vrot.slane %v1233_v47, %v2562_v13  ;;  %v1345_v61 = vsel %vm1344_vm15, %v1289_v49, %v1343_v52  ;;  %v1702_v62 = vrot.slane %v1163_v40, 9  ;;  %v1321_v4 = vrot.slane %v1240_v39, %v2562_v13  ;;  %v1709_v39 = vld [vmem:[%s2676_s5 + $0xa8] sm:$0xff]  ;;  %v1716_v49 = vld [vmem:[%s2676_s5 + $0xe0] sm:$0xff]  ;;  %v1718_v52 = vld [vmem:[%s2676_s5 + $0xf0] sm:$0xff] }
 0x268   :  { %v1234_v63 = vmax.f32 %v1122_v46, %v1692_v57  ;;  %v1131_v0 = vcombine.high %v1129_v54, %v1129_v54  ;;  %v1693_v1 = vrot.slane %v1130_v56, 9  ;;  %v1694_v3 = vrot.slane %v1129_v54, 9  ;;  %v1715_v46 = vld [vmem:[%s2676_s5 + $0xd8] sm:$0xff] }
 0x269   :  { %v1242_v5 = vmax.f32 %v1156_v27, %v1700_v51  ;;  %v1347_v16 = vsel %vm1346_vm0, %v1293_v58, %v1345_v61  ;;  %v1703_v2 = vrot.slane %v1165_v53, 9  ;;  %v1313_v9 = vrot.slane %v1238_v37, %v2562_v13  ;;  %v1706_v27 = vld [vmem:[%s2676_s5 + $0x90] sm:$0xff] }
 0x26a   :  { %v1695_v6 = vrot.slane %v1131_v0, 9  ;;  %v1235_v7 = vmax.f32 %v1130_v56, %v1693_v1  ;;  %v1236_v12 = vmax.f32 %v1129_v54, %v1694_v3  ;;  %v1297_v8 = vrot.slane %v1234_v63, %v2562_v13 }
 0x26b   :  { %v1243_v10 = vmax.f32 %v1164_v43, %v1701_v60  ;;  %v1325_v11 = vrot.slane %v1241_v50, %v2562_v13  ;;  %v1244_v18 = vmax.f32 %v1163_v40, %v1702_v62  ;;  %v1245_v21 = vmax.f32 %v1165_v53, %v1703_v2  ;;  %v1710_v40 = vld [vmem:[%s2676_s5 + $0xb0] sm:$0xff]  ;;  %v1712_v43 = vld [vmem:[%s2676_s5 + $0xc0] sm:$0xff]  ;;  %v1717_v50 = vld [vmem:[%s2676_s5 + $0xe8] sm:$0xff] }
 0x26c   :  { %v1237_v14 = vmax.f32 %v1131_v0, %v1695_v6  ;;  %v1301_v15 = vrot.slane %v1235_v7, %v2562_v13  ;;  %v1349_v17 = vsel %vm1348_vm1, %v1297_v8, %v1347_v16  ;;  %v1305_v20 = vrot.slane %v1236_v12, %v2562_v13  ;;  %v1719_v53 = vld [vmem:[%s2676_s5 + $0xf8] sm:$0xff] }
 0x26d   :  { %v1356_v22 = vsel %vm1342_vm13, %v1317_v59, %v1313_v9  ;;  %v1329_v45 = vrot.slane %v1242_v5, %v2562_v13  ;;  %v1333_v26 = vrot.slane %v1243_v10, %v2562_v13  ;;  %v1337_v31 = vrot.slane %v1244_v18, %v2562_v13 }
 0x26e   :  { %v1309_v23 = vrot.slane %v1237_v14, %v2562_v13  ;;  %v1351_v24 = vsel %vm1350_vm2, %v1301_v15, %v1349_v17  ;;  %v1357_v19 = vsel %vm1344_vm15, %v1321_v4, %v1356_v22  ;;  %v1341_v33 = vrot.slane %v1245_v21, %v2562_v13 }
 0x26f   :  { %v1353_v25 = vsel %vm1352_vm4, %v1305_v20, %v1351_v24  ;;  %v1358_v30 = vsel %vm1346_vm0, %v1325_v11, %v1357_v19  ;;  %v2014_v36 = vpack.c.bf16 %v1707_v55, %v1706_v27  ;;  %v2018_v13 = vpack.c.bf16 %v1709_v39, %v1708_v38 }
 0x270   :  { %v1355_v28 = vsel %vm1354_vm5, %v1309_v23, %v1353_v25  ;;  %v1359_v32 = vsel %vm1348_vm1, %v1329_v45, %v1358_v30  ;;  %v2022_v42 = vpack.c.bf16 %v1711_v41, %v1710_v40  ;;  %v2030_v47 = vpack.c.bf16 %v1715_v46, %v1714_v29 }
 0x271   :  { %1940 = vmatprep.mubr.f32.mxu0 %v1355_v28  ;;  %v1360_v34 = vsel %vm1350_vm2, %v1333_v26, %v1359_v32  ;;  %v2034_v51 = vpack.c.bf16 %v1717_v50, %v1716_v49  ;;  %v2038_v54 = vpack.c.bf16 %v1719_v53, %v1718_v52 }
 0x272   :  { %v1361_v35 = vsel %vm1352_vm4, %v1337_v31, %v1360_v34 }
 0x273   :  { %v1362_v37 = vsel %vm1354_vm5, %v1341_v33, %v1361_v35 }
 0x274   :  { %1941 = vmatmul.mubr.f32.vlgmr.msra.gmra.mrb[4].mxu0 %v1362_v37 }
 0x275   :  { %2013 = vmatpush3.bf16.msra.mxu0 %v2547_v48  ;;  %1975 = vmatprep.mubr.f32.mxu0 %v1355_v28  ;;  %v1713_v48 = vld [vmem:[%s2676_s5 + $0xc8] sm:$0xff] }
 0x276   :  { %2015 = vmatprep.subr.bf16.mxu0 %v2014_v36  ;;  %v2026_v44 = vpack.c.bf16 %v1713_v48, %v1712_v43 }
 0x279   :  { %2017 = vmatpush3.bf16.msra.mxu0 %v2014_v36 }
 0x27a   :  { %2019 = vmatprep.subr.bf16.mxu0 %v2018_v13 }
 0x27d   :  { %2021 = vmatpush3.bf16.msra.mxu0 %v2018_v13 }
 0x27e   :  { %2023 = vmatprep.subr.bf16.mxu0 %v2022_v42 }
 0x281   :  { %2025 = vmatpush3.bf16.msra.mxu0 %v2022_v42 }
 0x282   :  { %2027 = vmatprep.subr.bf16.mxu0 %v2026_v44 }
 0x285   :  { %2029 = vmatpush3.bf16.msra.mxu0 %v2026_v44 }
 0x286   :  { %2031 = vmatprep.subr.bf16.mxu0 %v2030_v47 }
 0x289   :  { %2033 = vmatpush3.bf16.msra.mxu0 %v2030_v47 }
 0x28a   :  { %2035 = vmatprep.subr.bf16.mxu0 %v2034_v51 }
 0x28d   :  { %2037 = vmatpush3.bf16.msra.mxu0 %v2034_v51 }
 0x28e   :  { %2039 = vmatprep.subr.bf16.mxu0 %v2038_v54 }
 0x291   :  { %2041 = vmatpush3.bf16.msra.mxu0 %v2038_v54 }
 0x294   :  { %1976 = vmatmul.mubr.f32.vlgmr.msra.gmra.mrb[6].mxu0 %v1362_v37 }
 0x295   :  { %2114 = shalt.err (!%p2111_p4)
}
 0x296   :  { %s2115_s5 = scalar_lea.hbm %s2677_s6, 512 }
 0x297   :  { %p2116_p5 = scmp.ne.s32.totalorder %s2677_s6, %s2115_s5  ;;  %p2119_p6 = scmp.lt.u32.totalorder %s2115_s5, %s2677_s6 }
 0x299   :  { %p2121_p7 = pnand %p2119_p6, %p2116_p5 }
 0x29b   :  { %2124 = shalt.err (!%p2121_p7)
}
 0x29c   :  { %s2153_s8 = smov 128   ;;  %s2154_s9 = smov 8  }
 0x29d   :  { %1547 = dma.vmem_to_hbm [thread:$0]  %s1542_s23, 512, %s2677_s6, [#allocation5], %s2153_s8, %s2153_s8, %s2154_s9  }
 0x29e   :  { %s2155_s11 = smov [#allocation6]  }
 0x29f   :  { %s1553_s12 = sshll.u32 %s2155_s11, 4  ;;  %s1554_s12 = int_to_ptr.vmem [resolvable:$true] %s1553_s12 }
 0x2a0   :  { %s2125_s13 = scalar_lea.vmem %s1554_s12, 256  ;;  %p2130_p9 = scmp.lt.s32.totalorder %s1554_s12, %s1554_s12 }
 0x2a1   :  { %p2126_p8 = scmp.ne.s32.totalorder %s1554_s12, %s2125_s13  ;;  %p2131_p10 = scmp.lt.s32.totalorder %s2125_s13, %s2125_s13 }
 0x2a3   :  { %p2132_p11 = por %p2131_p10, %p2130_p9 }
 0x2a5   :  { %p2133_p12 = pnand %p2132_p11, %p2126_p8 }
 0x347   :  { %v1942_v56 = vpop.f32.mrb[4].mxu0 }
 0x348   :  { %v1431_v57 = vpop.f32.mrb[5].mxu0 }
 0x367   :  { %v1977_v58 = vpop.f32.mrb[6].mxu0 }
 0x368   :  { %v1533_v59 = vmax.f32 %v1942_v56, %v1977_v58  ;;  %v1523_v60 = vpop.f32.mrb[7].mxu0 }
 0x369   :  { %v1532_v61 = vmax.f32 %v1431_v57, %v1523_v60 }
 0x36a   :  { %1535 = vst.msk [vmem:[#allocation6 + $0x8] sm:$0xff] %vm239_vm14, %v1533_v59 }
 0x36b   :  { %1534 = vst.msk [vmem:[#allocation6] sm:$0xff] %vm239_vm14, %v1532_v61 }
 0x36c   :  { %2136 = shalt.err (!%p2133_p12)
}
 0x36d   :  { %s2137_s2 = scalar_lea.hbm %s2678_s7, 256 }
 0x36e   :  { %p2138_p13 = scmp.ne.s32.totalorder %s2678_s7, %s2137_s2  ;;  %p2141_p0 = scmp.lt.u32.totalorder %s2137_s2, %s2678_s7 }
 0x370   :  { %p2143_p1 = pnand %p2141_p0, %p2138_p13 }
 0x372   :  { %2146 = shalt.err (!%p2143_p1)
}
 0x373   :  { %1559 = dma.vmem_to_hbm [thread:$0]  %s1554_s12, 256, %s2678_s7, [#allocation7], %s2153_s8, %s2153_s8, %s2154_s9  }
 0x374   :  { %2147 = dma.done.wait [#allocation5], 512  }
 0x375   :  { %2148 = vsyncadd [#allocation5], 4294966784 }
 0x376   :  { %2149 = dma.done.wait [#allocation7], 256  }
 0x377   :  { %2150 = vsyncadd [#allocation7], 4294967040 }
 0x378   :  { %1566 = vsyncpa [#allocation5], 1 }
 0x379   :  { %1567 = vsyncpa [#allocation7], 1 }

</bundles_post_ra>
